<compile_context>
chip_gen: v7x
topology: tpu7x:2x2x1
jax: 0.10.0
libtpu: 0.0.40
codegen_flags: <defaults>
</compile_context>

<pallas_src>
import functools

import numpy as np
import jax
import jax.numpy as jnp
from jax.experimental import pallas as pl
from jax.experimental.pallas import tpu as pltpu


def _round_up(v, m):
    return (v + m - 1) // m * m


def _resblock_kernel(x_ref, mask_ref, w1_ref, b1_ref, w2_ref, b2_ref, out_ref,
                     xpad_ref, hpad_ref, *, C, H, W, d, L):
    """One batch element per grid step.

    x_ref    : (1, C, H*W)        VMEM  -- unpadded input, spatial flattened row-major
    mask_ref : (2, H*W)           VMEM  -- [0]=left-tap validity, [1]=right-tap validity (0/1)
    w*_ref   : (9, C, C)          VMEM  -- per-tap channel-mixing matrices (tap, C_out, C_in)
    b*_ref   : (C, 1)             VMEM
    out_ref  : (1, C, H*W)        VMEM
    xpad_ref : (C, L + H*W + L)   VMEM scratch -- x with zero H-padding, interior at offset L
    hpad_ref : (C, L + H*W + L)   VMEM scratch -- intermediate activation, same layout
    """
    HW = H * W
    total = xpad_ref.shape[1]
    R = total - L - HW

    def lrelu(v):
        return jnp.where(v >= 0, v, 0.2 * v)

    lmask = mask_ref[0:1, :]   # (1, HW): 1.0 where w >= d      (needed for kx == 0 taps)
    rmask = mask_ref[1:2, :]   # (1, HW): 1.0 where w <  W - d  (needed for kx == 2 taps)

    def conv3x3(src_ref, w_ref, b_ref):
        # src_ref holds the image flattened row-major with >= d*W+d zeros on each side of the
        # interior [L, L+HW).  A (ky, kx) tap is then a pure lane shift of the interior by
        # ((ky-1)*W + (kx-1)) * d; row wrap-around of the kx shifts is killed by the masks.
        acc = jnp.zeros((C, HW), jnp.float32)
        for ky in range(3):
            for kx in range(3):
                t = ky * 3 + kx
                start = L + ((ky - 1) * W + (kx - 1)) * d
                win = src_ref[:, start:start + HW]
                if kx == 0:
                    win = win * lmask
                elif kx == 2:
                    win = win * rmask
                acc = acc + jnp.dot(w_ref[t], win,
                                    precision=jax.lax.Precision.HIGHEST,
                                    preferred_element_type=jnp.float32)
        return acc + b_ref[...]          # (C, 1) bias broadcasts over the HW lanes

    zl = jnp.zeros((C, L), jnp.float32)
    zr = jnp.zeros((C, R), jnp.float32)

    # ---- stage x into the zero-bordered scratch (interior write is 128-lane aligned) ----
    xpad_ref[:, :L] = zl
    xpad_ref[:, L + HW:] = zr
    xpad_ref[:, L:L + HW] = x_ref[0].astype(jnp.float32)

    # ---- conv1 + bias + LeakyReLU --------------------------------------------------------
    h1 = lrelu(conv3x3(xpad_ref, w1_ref, b1_ref))

    hpad_ref[:, :L] = zl
    hpad_ref[:, L + HW:] = zr
    hpad_ref[:, L:L + HW] = h1

    # ---- conv2 + bias + residual + LeakyReLU ---------------------------------------------
    y = conv3x3(hpad_ref, w2_ref, b2_ref) + x_ref[0].astype(jnp.float32)
    out_ref[0] = lrelu(y).astype(out_ref.dtype)


def res_block(x, w1, b1, w2, b2, *, dilation=1):
    """x: (B, C, H, W); w*: (C, C, 3, 3); b*: (C,). Returns (B, C, H, W)."""
    B, C, H, W = x.shape
    d = int(dilation)
    HW = H * W
    # Left/right zero-border length: >= d*W + d (covers the largest tap shift), rounded to a
    # multiple of 128 so the interior write / read offset is lane-aligned.
    L = max(128, _round_up(d * W + d, 128))
    R = L

    # Metadata-only reshape for contiguous NCHW (no HBM pass).
    x_flat = x.reshape(B, C, HW)

    # Per-tap (tap, C_out, C_in) channel-mixing matrices; tap index t = ky*3 + kx.
    w1t = jnp.transpose(w1, (2, 3, 0, 1)).reshape(9, C, C).astype(jnp.float32)
    w2t = jnp.transpose(w2, (2, 3, 0, 1)).reshape(9, C, C).astype(jnp.float32)
    b1c = b1.reshape(C, 1).astype(jnp.float32)
    b2c = b2.reshape(C, 1).astype(jnp.float32)

    # Static column-validity masks for the horizontal edge taps (built host-side).
    col = np.arange(HW) % W
    masks = jnp.asarray(
        np.stack([(col >= d), (col < W - d)]).astype(np.float32))       # (2, HW)

    kernel = functools.partial(_resblock_kernel, C=C, H=H, W=W, d=d, L=L)

    out = pl.pallas_call(
        kernel,
        out_shape=jax.ShapeDtypeStruct((B, C, HW), x.dtype),
        grid=(B,),
        in_specs=[
            pl.BlockSpec((1, C, HW), lambda b: (b, 0, 0)),   # activations (unpadded)
            pl.BlockSpec((2, HW), lambda b: (0, 0)),         # edge-tap masks
            pl.BlockSpec((9, C, C), lambda b: (0, 0, 0)),    # conv1 tap matrices
            pl.BlockSpec((C, 1), lambda b: (0, 0)),          # conv1 bias
            pl.BlockSpec((9, C, C), lambda b: (0, 0, 0)),    # conv2 tap matrices
            pl.BlockSpec((C, 1), lambda b: (0, 0)),          # conv2 bias
        ],
        out_specs=pl.BlockSpec((1, C, HW), lambda b: (b, 0, 0)),
        scratch_shapes=[
            pltpu.VMEM((C, L + HW + R), jnp.float32),        # padded x
            pltpu.VMEM((C, L + HW + R), jnp.float32),        # padded intermediate h1
        ],
        compiler_params=pltpu.CompilerParams(dimension_semantics=("parallel",)),
    )(x_flat, masks, w1t, b1c, w2t, b2c)
    return out.reshape(B, C, H, W)


def _reference(x, w1, b1, w2, b2, dilation):
    """Pure-JAX reference mirroring the PyTorch ResBlock forward."""
    d = dilation

    def conv(inp, w, b):
        y = jax.lax.conv_general_dilated(
            inp, w,
            window_strides=(1, 1),
            padding=[(d, d), (d, d)],
            rhs_dilation=(d, d),
            dimension_numbers=("NCHW", "OIHW", "NCHW"),
            precision=jax.lax.Precision.HIGHEST,
        )
        return y + b[None, :, None, None]

    def lrelu(v):
        return jnp.where(v >= 0, v, 0.2 * v)

    h = lrelu(conv(x, w1, b1))
    return lrelu(conv(h, w2, b2) + x)


if __name__ == "__main__":
    key = jax.random.PRNGKey(0)
    kx, kw1, kb1, kw2, kb2 = jax.random.split(key, 5)

    B, C, H, W = 2, 4, 16, 16
    x = jax.random.normal(kx, (B, C, H, W), jnp.float32)
    w1 = jax.random.normal(kw1, (C, C, 3, 3), jnp.float32) * 0.1
    b1 = jax.random.normal(kb1, (C,), jnp.float32) * 0.1
    w2 = jax.random.normal(kw2, (C, C, 3, 3), jnp.float32) * 0.1
    b2 = jax.random.normal(kb2, (C,), jnp.float32) * 0.1

    ok = True
    for dilation in (1, 2):
        out = res_block(x, w1, b1, w2, b2, dilation=dilation)
        out = jax.block_until_ready(out)
        ref = _reference(x, w1, b1, w2, b2, dilation)
        assert out.shape == (B, C, H, W), out.shape
        ok = ok and bool(jnp.allclose(out, ref, atol=1e-3, rtol=1e-3))

    assert ok, "mismatch vs reference"
    print("KERNEL_OK")
</pallas_src>

<mosaic_0001>
module attributes {stable_mosaic.version = 11 : i64} {
  func.func @_resblock_kernel(%arg0: i32, %arg1: memref<1x4x256xf32, #tpu.memory_space<vmem>>, %arg2: memref<2x256xf32, #tpu.memory_space<vmem>>, %arg3: memref<9x4x4xf32, #tpu.memory_space<vmem>>, %arg4: memref<4x1xf32, #tpu.memory_space<vmem>>, %arg5: memref<9x4x4xf32, #tpu.memory_space<vmem>>, %arg6: memref<4x1xf32, #tpu.memory_space<vmem>>, %arg7: memref<1x4x256xf32, #tpu.memory_space<vmem>>, %arg8: memref<4x512xf32, #tpu.memory_space<vmem>>, %arg9: memref<4x512xf32, #tpu.memory_space<vmem>>) attributes {dimension_semantics = [#tpu.dimension_semantics<parallel>], iteration_bounds = array<i64: 2>, scalar_prefetch = 0 : i64, scratch_operands = 2 : i64, tpu.core_type = #tpu.core_type<tc>, window_params = [{transform_indices = @transform_0, window_bounds = array<i64: 1, 4, 256>}, {pipeline_mode = #tpu.pipeline_mode<synchronous>, transform_indices = @transform_1, window_bounds = array<i64: 2, 256>}, {pipeline_mode = #tpu.pipeline_mode<synchronous>, transform_indices = @transform_2, window_bounds = array<i64: 9, 4, 4>}, {pipeline_mode = #tpu.pipeline_mode<synchronous>, transform_indices = @transform_3, window_bounds = array<i64: 4, 1>}, {pipeline_mode = #tpu.pipeline_mode<synchronous>, transform_indices = @transform_4, window_bounds = array<i64: 9, 4, 4>}, {pipeline_mode = #tpu.pipeline_mode<synchronous>, transform_indices = @transform_5, window_bounds = array<i64: 4, 1>}, {transform_indices = @transform_6, window_bounds = array<i64: 1, 4, 256>}]} {
    %c0 = arith.constant 0 : index
    %c0_0 = arith.constant 0 : index
    %0 = vector.load %arg2[%c0, %c0_0] : memref<2x256xf32, #tpu.memory_space<vmem>>, vector<1x256xf32>
    %c1 = arith.constant 1 : index
    %c0_1 = arith.constant 0 : index
    %1 = vector.load %arg2[%c1, %c0_1] : memref<2x256xf32, #tpu.memory_space<vmem>>, vector<1x256xf32>
    %cst = arith.constant 0.000000e+00 : f32
    %2 = vector.broadcast %cst : f32 to vector<4x128xf32>
    %cst_2 = arith.constant 0.000000e+00 : f32
    %3 = vector.broadcast %cst_2 : f32 to vector<4x128xf32>
    %c0_3 = arith.constant 0 : index
    %c0_4 = arith.constant 0 : index
    %4 = vector.load %arg8[%c0_3, %c0_4] : memref<4x512xf32, #tpu.memory_space<vmem>>, vector<4x128xf32>
    tpu.vector_store %arg8[%c0_3, %c0_4], %2 {strides = array<i32>} : memref<4x512xf32, #tpu.memory_space<vmem>>, vector<4x128xf32>,
    %c0_5 = arith.constant 0 : index
    %c384 = arith.constant 384 : index
    %5 = vector.load %arg8[%c0_5, %c384] : memref<4x512xf32, #tpu.memory_space<vmem>>, vector<4x128xf32>
    tpu.vector_store %arg8[%c0_5, %c384], %3 {strides = array<i32>} : memref<4x512xf32, #tpu.memory_space<vmem>>, vector<4x128xf32>,
    %c0_6 = arith.constant 0 : index
    %c0_7 = arith.constant 0 : index
    %c0_8 = arith.constant 0 : index
    %6 = vector.load %arg1[%c0_6, %c0_7, %c0_8] : memref<1x4x256xf32, #tpu.memory_space<vmem>>, vector<1x4x256xf32>
    %7 = vector.shape_cast %6 : vector<1x4x256xf32> to vector<4x256xf32>
    %c0_9 = arith.constant 0 : index
    %c128 = arith.constant 128 : index
    %8 = vector.load %arg8[%c0_9, %c128] : memref<4x512xf32, #tpu.memory_space<vmem>>, vector<4x256xf32>
    tpu.vector_store %arg8[%c0_9, %c128], %7 {strides = array<i32>} : memref<4x512xf32, #tpu.memory_space<vmem>>, vector<4x256xf32>,
    %cst_10 = arith.constant 0.000000e+00 : f32
    %9 = vector.broadcast %cst_10 : f32 to vector<4x256xf32>
    %c0_11 = arith.constant 0 : index
    %c111 = arith.constant 111 : index
    %10 = vector.load %arg8[%c0_11, %c111] : memref<4x512xf32, #tpu.memory_space<vmem>>, vector<4x256xf32>
    %11 = vector.broadcast %0 : vector<1x256xf32> to vector<4x256xf32>
    %12 = arith.mulf %10, %11 : vector<4x256xf32>
    %c0_12 = arith.constant 0 : index
    %c0_13 = arith.constant 0 : index
    %c0_14 = arith.constant 0 : index
    %13 = vector.load %arg3[%c0_12, %c0_13, %c0_14] : memref<9x4x4xf32, #tpu.memory_space<vmem>>, vector<1x4x4xf32>
    %14 = vector.shape_cast %13 : vector<1x4x4xf32> to vector<4x4xf32>
    %cst_15 = arith.constant dense<0.000000e+00> : vector<4x256xf32>
    %15 = tpu.matmul %14, %12, %cst_15 {dimension_numbers = #tpu.dot_dimension_numbers<[1], [0], [0], [1], [0, 0, 1, 1], [], []>, precision = #tpu.contract_precision<fp32>} : vector<4x4xf32>, vector<4x256xf32>, vector<4x256xf32> -> vector<4x256xf32>
    %16 = arith.addf %9, %15 : vector<4x256xf32>
    %c0_16 = arith.constant 0 : index
    %c112 = arith.constant 112 : index
    %17 = vector.load %arg8[%c0_16, %c112] : memref<4x512xf32, #tpu.memory_space<vmem>>, vector<4x256xf32>
    %c1_17 = arith.constant 1 : index
    %c0_18 = arith.constant 0 : index
    %c0_19 = arith.constant 0 : index
    %18 = vector.load %arg3[%c1_17, %c0_18, %c0_19] : memref<9x4x4xf32, #tpu.memory_space<vmem>>, vector<1x4x4xf32>
    %19 = vector.shape_cast %18 : vector<1x4x4xf32> to vector<4x4xf32>
    %cst_20 = arith.constant dense<0.000000e+00> : vector<4x256xf32>
    %20 = tpu.matmul %19, %17, %cst_20 {dimension_numbers = #tpu.dot_dimension_numbers<[1], [0], [0], [1], [0, 0, 1, 1], [], []>, precision = #tpu.contract_precision<fp32>} : vector<4x4xf32>, vector<4x256xf32>, vector<4x256xf32> -> vector<4x256xf32>
    %21 = arith.addf %16, %20 : vector<4x256xf32>
    %c0_21 = arith.constant 0 : index
    %c113 = arith.constant 113 : index
    %22 = vector.load %arg8[%c0_21, %c113] : memref<4x512xf32, #tpu.memory_space<vmem>>, vector<4x256xf32>
    %23 = vector.broadcast %1 : vector<1x256xf32> to vector<4x256xf32>
    %24 = arith.mulf %22, %23 : vector<4x256xf32>
    %c2 = arith.constant 2 : index
    %c0_22 = arith.constant 0 : index
    %c0_23 = arith.constant 0 : index
    %25 = vector.load %arg3[%c2, %c0_22, %c0_23] : memref<9x4x4xf32, #tpu.memory_space<vmem>>, vector<1x4x4xf32>
    %26 = vector.shape_cast %25 : vector<1x4x4xf32> to vector<4x4xf32>
    %cst_24 = arith.constant dense<0.000000e+00> : vector<4x256xf32>
    %27 = tpu.matmul %26, %24, %cst_24 {dimension_numbers = #tpu.dot_dimension_numbers<[1], [0], [0], [1], [0, 0, 1, 1], [], []>, precision = #tpu.contract_precision<fp32>} : vector<4x4xf32>, vector<4x256xf32>, vector<4x256xf32> -> vector<4x256xf32>
    %28 = arith.addf %21, %27 : vector<4x256xf32>
    %c0_25 = arith.constant 0 : index
    %c127 = arith.constant 127 : index
    %29 = vector.load %arg8[%c0_25, %c127] : memref<4x512xf32, #tpu.memory_space<vmem>>, vector<4x256xf32>
    %30 = vector.broadcast %0 : vector<1x256xf32> to vector<4x256xf32>
    %31 = arith.mulf %29, %30 : vector<4x256xf32>
    %c3 = arith.constant 3 : index
    %c0_26 = arith.constant 0 : index
    %c0_27 = arith.constant 0 : index
    %32 = vector.load %arg3[%c3, %c0_26, %c0_27] : memref<9x4x4xf32, #tpu.memory_space<vmem>>, vector<1x4x4xf32>
    %33 = vector.shape_cast %32 : vector<1x4x4xf32> to vector<4x4xf32>
    %cst_28 = arith.constant dense<0.000000e+00> : vector<4x256xf32>
    %34 = tpu.matmul %33, %31, %cst_28 {dimension_numbers = #tpu.dot_dimension_numbers<[1], [0], [0], [1], [0, 0, 1, 1], [], []>, precision = #tpu.contract_precision<fp32>} : vector<4x4xf32>, vector<4x256xf32>, vector<4x256xf32> -> vector<4x256xf32>
    %35 = arith.addf %28, %34 : vector<4x256xf32>
    %c0_29 = arith.constant 0 : index
    %c128_30 = arith.constant 128 : index
    %36 = vector.load %arg8[%c0_29, %c128_30] : memref<4x512xf32, #tpu.memory_space<vmem>>, vector<4x256xf32>
    %c4 = arith.constant 4 : index
    %c0_31 = arith.constant 0 : index
    %c0_32 = arith.constant 0 : index
    %37 = vector.load %arg3[%c4, %c0_31, %c0_32] : memref<9x4x4xf32, #tpu.memory_space<vmem>>, vector<1x4x4xf32>
    %38 = vector.shape_cast %37 : vector<1x4x4xf32> to vector<4x4xf32>
    %cst_33 = arith.constant dense<0.000000e+00> : vector<4x256xf32>
    %39 = tpu.matmul %38, %36, %cst_33 {dimension_numbers = #tpu.dot_dimension_numbers<[1], [0], [0], [1], [0, 0, 1, 1], [], []>, precision = #tpu.contract_precision<fp32>} : vector<4x4xf32>, vector<4x256xf32>, vector<4x256xf32> -> vector<4x256xf32>
    %40 = arith.addf %35, %39 : vector<4x256xf32>
    %c0_34 = arith.constant 0 : index
    %c129 = arith.constant 129 : index
    %41 = vector.load %arg8[%c0_34, %c129] : memref<4x512xf32, #tpu.memory_space<vmem>>, vector<4x256xf32>
    %42 = vector.broadcast %1 : vector<1x256xf32> to vector<4x256xf32>
    %43 = arith.mulf %41, %42 : vector<4x256xf32>
    %c5 = arith.constant 5 : index
    %c0_35 = arith.constant 0 : index
    %c0_36 = arith.constant 0 : index
    %44 = vector.load %arg3[%c5, %c0_35, %c0_36] : memref<9x4x4xf32, #tpu.memory_space<vmem>>, vector<1x4x4xf32>
    %45 = vector.shape_cast %44 : vector<1x4x4xf32> to vector<4x4xf32>
    %cst_37 = arith.constant dense<0.000000e+00> : vector<4x256xf32>
    %46 = tpu.matmul %45, %43, %cst_37 {dimension_numbers = #tpu.dot_dimension_numbers<[1], [0], [0], [1], [0, 0, 1, 1], [], []>, precision = #tpu.contract_precision<fp32>} : vector<4x4xf32>, vector<4x256xf32>, vector<4x256xf32> -> vector<4x256xf32>
    %47 = arith.addf %40, %46 : vector<4x256xf32>
    %c0_38 = arith.constant 0 : index
    %c143 = arith.constant 143 : index
    %48 = vector.load %arg8[%c0_38, %c143] : memref<4x512xf32, #tpu.memory_space<vmem>>, vector<4x256xf32>
    %49 = vector.broadcast %0 : vector<1x256xf32> to vector<4x256xf32>
    %50 = arith.mulf %48, %49 : vector<4x256xf32>
    %c6 = arith.constant 6 : index
    %c0_39 = arith.constant 0 : index
    %c0_40 = arith.constant 0 : index
    %51 = vector.load %arg3[%c6, %c0_39, %c0_40] : memref<9x4x4xf32, #tpu.memory_space<vmem>>, vector<1x4x4xf32>
    %52 = vector.shape_cast %51 : vector<1x4x4xf32> to vector<4x4xf32>
    %cst_41 = arith.constant dense<0.000000e+00> : vector<4x256xf32>
    %53 = tpu.matmul %52, %50, %cst_41 {dimension_numbers = #tpu.dot_dimension_numbers<[1], [0], [0], [1], [0, 0, 1, 1], [], []>, precision = #tpu.contract_precision<fp32>} : vector<4x4xf32>, vector<4x256xf32>, vector<4x256xf32> -> vector<4x256xf32>
    %54 = arith.addf %47, %53 : vector<4x256xf32>
    %c0_42 = arith.constant 0 : index
    %c144 = arith.constant 144 : index
    %55 = vector.load %arg8[%c0_42, %c144] : memref<4x512xf32, #tpu.memory_space<vmem>>, vector<4x256xf32>
    %c7 = arith.constant 7 : index
    %c0_43 = arith.constant 0 : index
    %c0_44 = arith.constant 0 : index
    %56 = vector.load %arg3[%c7, %c0_43, %c0_44] : memref<9x4x4xf32, #tpu.memory_space<vmem>>, vector<1x4x4xf32>
    %57 = vector.shape_cast %56 : vector<1x4x4xf32> to vector<4x4xf32>
    %cst_45 = arith.constant dense<0.000000e+00> : vector<4x256xf32>
    %58 = tpu.matmul %57, %55, %cst_45 {dimension_numbers = #tpu.dot_dimension_numbers<[1], [0], [0], [1], [0, 0, 1, 1], [], []>, precision = #tpu.contract_precision<fp32>} : vector<4x4xf32>, vector<4x256xf32>, vector<4x256xf32> -> vector<4x256xf32>
    %59 = arith.addf %54, %58 : vector<4x256xf32>
    %c0_46 = arith.constant 0 : index
    %c145 = arith.constant 145 : index
    %60 = vector.load %arg8[%c0_46, %c145] : memref<4x512xf32, #tpu.memory_space<vmem>>, vector<4x256xf32>
    %61 = vector.broadcast %1 : vector<1x256xf32> to vector<4x256xf32>
    %62 = arith.mulf %60, %61 : vector<4x256xf32>
    %c8 = arith.constant 8 : index
    %c0_47 = arith.constant 0 : index
    %c0_48 = arith.constant 0 : index
    %63 = vector.load %arg3[%c8, %c0_47, %c0_48] : memref<9x4x4xf32, #tpu.memory_space<vmem>>, vector<1x4x4xf32>
    %64 = vector.shape_cast %63 : vector<1x4x4xf32> to vector<4x4xf32>
    %cst_49 = arith.constant dense<0.000000e+00> : vector<4x256xf32>
    %65 = tpu.matmul %64, %62, %cst_49 {dimension_numbers = #tpu.dot_dimension_numbers<[1], [0], [0], [1], [0, 0, 1, 1], [], []>, precision = #tpu.contract_precision<fp32>} : vector<4x4xf32>, vector<4x256xf32>, vector<4x256xf32> -> vector<4x256xf32>
    %66 = arith.addf %59, %65 : vector<4x256xf32>
    %c0_50 = arith.constant 0 : index
    %c0_51 = arith.constant 0 : index
    %67 = vector.load %arg4[%c0_50, %c0_51] : memref<4x1xf32, #tpu.memory_space<vmem>>, vector<4x1xf32>
    %68 = vector.broadcast %67 : vector<4x1xf32> to vector<4x256xf32>
    %69 = arith.addf %66, %68 : vector<4x256xf32>
    %cst_52 = arith.constant 0.000000e+00 : f32
    %70 = vector.broadcast %cst_52 : f32 to vector<4x256xf32>
    %71 = arith.cmpf oge, %69, %70 : vector<4x256xf32>
    %cst_53 = arith.constant 2.000000e-01 : f32
    %72 = vector.broadcast %cst_53 : f32 to vector<4x256xf32>
    %73 = arith.mulf %72, %69 : vector<4x256xf32>
    %74 = arith.select %71, %69, %73 : vector<4x256xi1>, vector<4x256xf32>
    %c0_54 = arith.constant 0 : index
    %c0_55 = arith.constant 0 : index
    %75 = vector.load %arg9[%c0_54, %c0_55] : memref<4x512xf32, #tpu.memory_space<vmem>>, vector<4x128xf32>
    tpu.vector_store %arg9[%c0_54, %c0_55], %2 {strides = array<i32>} : memref<4x512xf32, #tpu.memory_space<vmem>>, vector<4x128xf32>,
    %c0_56 = arith.constant 0 : index
    %c384_57 = arith.constant 384 : index
    %76 = vector.load %arg9[%c0_56, %c384_57] : memref<4x512xf32, #tpu.memory_space<vmem>>, vector<4x128xf32>
    tpu.vector_store %arg9[%c0_56, %c384_57], %3 {strides = array<i32>} : memref<4x512xf32, #tpu.memory_space<vmem>>, vector<4x128xf32>,
    %c0_58 = arith.constant 0 : index
    %c128_59 = arith.constant 128 : index
    %77 = vector.load %arg9[%c0_58, %c128_59] : memref<4x512xf32, #tpu.memory_space<vmem>>, vector<4x256xf32>
    tpu.vector_store %arg9[%c0_58, %c128_59], %74 {strides = array<i32>} : memref<4x512xf32, #tpu.memory_space<vmem>>, vector<4x256xf32>,
    %cst_60 = arith.constant 0.000000e+00 : f32
    %78 = vector.broadcast %cst_60 : f32 to vector<4x256xf32>
    %c0_61 = arith.constant 0 : index
    %c111_62 = arith.constant 111 : index
    %79 = vector.load %arg9[%c0_61, %c111_62] : memref<4x512xf32, #tpu.memory_space<vmem>>, vector<4x256xf32>
    %80 = vector.broadcast %0 : vector<1x256xf32> to vector<4x256xf32>
    %81 = arith.mulf %79, %80 : vector<4x256xf32>
    %c0_63 = arith.constant 0 : index
    %c0_64 = arith.constant 0 : index
    %c0_65 = arith.constant 0 : index
    %82 = vector.load %arg5[%c0_63, %c0_64, %c0_65] : memref<9x4x4xf32, #tpu.memory_space<vmem>>, vector<1x4x4xf32>
    %83 = vector.shape_cast %82 : vector<1x4x4xf32> to vector<4x4xf32>
    %cst_66 = arith.constant dense<0.000000e+00> : vector<4x256xf32>
    %84 = tpu.matmul %83, %81, %cst_66 {dimension_numbers = #tpu.dot_dimension_numbers<[1], [0], [0], [1], [0, 0, 1, 1], [], []>, precision = #tpu.contract_precision<fp32>} : vector<4x4xf32>, vector<4x256xf32>, vector<4x256xf32> -> vector<4x256xf32>
    %85 = arith.addf %78, %84 : vector<4x256xf32>
    %c0_67 = arith.constant 0 : index
    %c112_68 = arith.constant 112 : index
    %86 = vector.load %arg9[%c0_67, %c112_68] : memref<4x512xf32, #tpu.memory_space<vmem>>, vector<4x256xf32>
    %c1_69 = arith.constant 1 : index
    %c0_70 = arith.constant 0 : index
    %c0_71 = arith.constant 0 : index
    %87 = vector.load %arg5[%c1_69, %c0_70, %c0_71] : memref<9x4x4xf32, #tpu.memory_space<vmem>>, vector<1x4x4xf32>
    %88 = vector.shape_cast %87 : vector<1x4x4xf32> to vector<4x4xf32>
    %cst_72 = arith.constant dense<0.000000e+00> : vector<4x256xf32>
    %89 = tpu.matmul %88, %86, %cst_72 {dimension_numbers = #tpu.dot_dimension_numbers<[1], [0], [0], [1], [0, 0, 1, 1], [], []>, precision = #tpu.contract_precision<fp32>} : vector<4x4xf32>, vector<4x256xf32>, vector<4x256xf32> -> vector<4x256xf32>
    %90 = arith.addf %85, %89 : vector<4x256xf32>
    %c0_73 = arith.constant 0 : index
    %c113_74 = arith.constant 113 : index
    %91 = vector.load %arg9[%c0_73, %c113_74] : memref<4x512xf32, #tpu.memory_space<vmem>>, vector<4x256xf32>
    %92 = vector.broadcast %1 : vector<1x256xf32> to vector<4x256xf32>
    %93 = arith.mulf %91, %92 : vector<4x256xf32>
    %c2_75 = arith.constant 2 : index
    %c0_76 = arith.constant 0 : index
    %c0_77 = arith.constant 0 : index
    %94 = vector.load %arg5[%c2_75, %c0_76, %c0_77] : memref<9x4x4xf32, #tpu.memory_space<vmem>>, vector<1x4x4xf32>
    %95 = vector.shape_cast %94 : vector<1x4x4xf32> to vector<4x4xf32>
    %cst_78 = arith.constant dense<0.000000e+00> : vector<4x256xf32>
    %96 = tpu.matmul %95, %93, %cst_78 {dimension_numbers = #tpu.dot_dimension_numbers<[1], [0], [0], [1], [0, 0, 1, 1], [], []>, precision = #tpu.contract_precision<fp32>} : vector<4x4xf32>, vector<4x256xf32>, vector<4x256xf32> -> vector<4x256xf32>
    %97 = arith.addf %90, %96 : vector<4x256xf32>
    %c0_79 = arith.constant 0 : index
    %c127_80 = arith.constant 127 : index
    %98 = vector.load %arg9[%c0_79, %c127_80] : memref<4x512xf32, #tpu.memory_space<vmem>>, vector<4x256xf32>
    %99 = vector.broadcast %0 : vector<1x256xf32> to vector<4x256xf32>
    %100 = arith.mulf %98, %99 : vector<4x256xf32>
    %c3_81 = arith.constant 3 : index
    %c0_82 = arith.constant 0 : index
    %c0_83 = arith.constant 0 : index
    %101 = vector.load %arg5[%c3_81, %c0_82, %c0_83] : memref<9x4x4xf32, #tpu.memory_space<vmem>>, vector<1x4x4xf32>
    %102 = vector.shape_cast %101 : vector<1x4x4xf32> to vector<4x4xf32>
    %cst_84 = arith.constant dense<0.000000e+00> : vector<4x256xf32>
    %103 = tpu.matmul %102, %100, %cst_84 {dimension_numbers = #tpu.dot_dimension_numbers<[1], [0], [0], [1], [0, 0, 1, 1], [], []>, precision = #tpu.contract_precision<fp32>} : vector<4x4xf32>, vector<4x256xf32>, vector<4x256xf32> -> vector<4x256xf32>
    %104 = arith.addf %97, %103 : vector<4x256xf32>
    %c0_85 = arith.constant 0 : index
    %c128_86 = arith.constant 128 : index
    %105 = vector.load %arg9[%c0_85, %c128_86] : memref<4x512xf32, #tpu.memory_space<vmem>>, vector<4x256xf32>
    %c4_87 = arith.constant 4 : index
    %c0_88 = arith.constant 0 : index
    %c0_89 = arith.constant 0 : index
    %106 = vector.load %arg5[%c4_87, %c0_88, %c0_89] : memref<9x4x4xf32, #tpu.memory_space<vmem>>, vector<1x4x4xf32>
    %107 = vector.shape_cast %106 : vector<1x4x4xf32> to vector<4x4xf32>
    %cst_90 = arith.constant dense<0.000000e+00> : vector<4x256xf32>
    %108 = tpu.matmul %107, %105, %cst_90 {dimension_numbers = #tpu.dot_dimension_numbers<[1], [0], [0], [1], [0, 0, 1, 1], [], []>, precision = #tpu.contract_precision<fp32>} : vector<4x4xf32>, vector<4x256xf32>, vector<4x256xf32> -> vector<4x256xf32>
    %109 = arith.addf %104, %108 : vector<4x256xf32>
    %c0_91 = arith.constant 0 : index
    %c129_92 = arith.constant 129 : index
    %110 = vector.load %arg9[%c0_91, %c129_92] : memref<4x512xf32, #tpu.memory_space<vmem>>, vector<4x256xf32>
    %111 = vector.broadcast %1 : vector<1x256xf32> to vector<4x256xf32>
    %112 = arith.mulf %110, %111 : vector<4x256xf32>
    %c5_93 = arith.constant 5 : index
    %c0_94 = arith.constant 0 : index
    %c0_95 = arith.constant 0 : index
    %113 = vector.load %arg5[%c5_93, %c0_94, %c0_95] : memref<9x4x4xf32, #tpu.memory_space<vmem>>, vector<1x4x4xf32>
    %114 = vector.shape_cast %113 : vector<1x4x4xf32> to vector<4x4xf32>
    %cst_96 = arith.constant dense<0.000000e+00> : vector<4x256xf32>
    %115 = tpu.matmul %114, %112, %cst_96 {dimension_numbers = #tpu.dot_dimension_numbers<[1], [0], [0], [1], [0, 0, 1, 1], [], []>, precision = #tpu.contract_precision<fp32>} : vector<4x4xf32>, vector<4x256xf32>, vector<4x256xf32> -> vector<4x256xf32>
    %116 = arith.addf %109, %115 : vector<4x256xf32>
    %c0_97 = arith.constant 0 : index
    %c143_98 = arith.constant 143 : index
    %117 = vector.load %arg9[%c0_97, %c143_98] : memref<4x512xf32, #tpu.memory_space<vmem>>, vector<4x256xf32>
    %118 = vector.broadcast %0 : vector<1x256xf32> to vector<4x256xf32>
    %119 = arith.mulf %117, %118 : vector<4x256xf32>
    %c6_99 = arith.constant 6 : index
    %c0_100 = arith.constant 0 : index
    %c0_101 = arith.constant 0 : index
    %120 = vector.load %arg5[%c6_99, %c0_100, %c0_101] : memref<9x4x4xf32, #tpu.memory_space<vmem>>, vector<1x4x4xf32>
    %121 = vector.shape_cast %120 : vector<1x4x4xf32> to vector<4x4xf32>
    %cst_102 = arith.constant dense<0.000000e+00> : vector<4x256xf32>
    %122 = tpu.matmul %121, %119, %cst_102 {dimension_numbers = #tpu.dot_dimension_numbers<[1], [0], [0], [1], [0, 0, 1, 1], [], []>, precision = #tpu.contract_precision<fp32>} : vector<4x4xf32>, vector<4x256xf32>, vector<4x256xf32> -> vector<4x256xf32>
    %123 = arith.addf %116, %122 : vector<4x256xf32>
    %c0_103 = arith.constant 0 : index
    %c144_104 = arith.constant 144 : index
    %124 = vector.load %arg9[%c0_103, %c144_104] : memref<4x512xf32, #tpu.memory_space<vmem>>, vector<4x256xf32>
    %c7_105 = arith.constant 7 : index
    %c0_106 = arith.constant 0 : index
    %c0_107 = arith.constant 0 : index
    %125 = vector.load %arg5[%c7_105, %c0_106, %c0_107] : memref<9x4x4xf32, #tpu.memory_space<vmem>>, vector<1x4x4xf32>
    %126 = vector.shape_cast %125 : vector<1x4x4xf32> to vector<4x4xf32>
    %cst_108 = arith.constant dense<0.000000e+00> : vector<4x256xf32>
    %127 = tpu.matmul %126, %124, %cst_108 {dimension_numbers = #tpu.dot_dimension_numbers<[1], [0], [0], [1], [0, 0, 1, 1], [], []>, precision = #tpu.contract_precision<fp32>} : vector<4x4xf32>, vector<4x256xf32>, vector<4x256xf32> -> vector<4x256xf32>
    %128 = arith.addf %123, %127 : vector<4x256xf32>
    %c0_109 = arith.constant 0 : index
    %c145_110 = arith.constant 145 : index
    %129 = vector.load %arg9[%c0_109, %c145_110] : memref<4x512xf32, #tpu.memory_space<vmem>>, vector<4x256xf32>
    %130 = vector.broadcast %1 : vector<1x256xf32> to vector<4x256xf32>
    %131 = arith.mulf %129, %130 : vector<4x256xf32>
    %c8_111 = arith.constant 8 : index
    %c0_112 = arith.constant 0 : index
    %c0_113 = arith.constant 0 : index
    %132 = vector.load %arg5[%c8_111, %c0_112, %c0_113] : memref<9x4x4xf32, #tpu.memory_space<vmem>>, vector<1x4x4xf32>
    %133 = vector.shape_cast %132 : vector<1x4x4xf32> to vector<4x4xf32>
    %cst_114 = arith.constant dense<0.000000e+00> : vector<4x256xf32>
    %134 = tpu.matmul %133, %131, %cst_114 {dimension_numbers = #tpu.dot_dimension_numbers<[1], [0], [0], [1], [0, 0, 1, 1], [], []>, precision = #tpu.contract_precision<fp32>} : vector<4x4xf32>, vector<4x256xf32>, vector<4x256xf32> -> vector<4x256xf32>
    %135 = arith.addf %128, %134 : vector<4x256xf32>
    %c0_115 = arith.constant 0 : index
    %c0_116 = arith.constant 0 : index
    %136 = vector.load %arg6[%c0_115, %c0_116] : memref<4x1xf32, #tpu.memory_space<vmem>>, vector<4x1xf32>
    %137 = vector.broadcast %136 : vector<4x1xf32> to vector<4x256xf32>
    %138 = arith.addf %135, %137 : vector<4x256xf32>
    %c0_117 = arith.constant 0 : index
    %c0_118 = arith.constant 0 : index
    %c0_119 = arith.constant 0 : index
    %139 = vector.load %arg1[%c0_117, %c0_118, %c0_119] : memref<1x4x256xf32, #tpu.memory_space<vmem>>, vector<1x4x256xf32>
    %140 = vector.shape_cast %139 : vector<1x4x256xf32> to vector<4x256xf32>
    %141 = arith.addf %138, %140 : vector<4x256xf32>
    %cst_120 = arith.constant 0.000000e+00 : f32
    %142 = vector.broadcast %cst_120 : f32 to vector<4x256xf32>
    %143 = arith.cmpf oge, %141, %142 : vector<4x256xf32>
    %cst_121 = arith.constant 2.000000e-01 : f32
    %144 = vector.broadcast %cst_121 : f32 to vector<4x256xf32>
    %145 = arith.mulf %144, %141 : vector<4x256xf32>
    %146 = arith.select %143, %141, %145 : vector<4x256xi1>, vector<4x256xf32>
    %c0_122 = arith.constant 0 : index
    %c0_123 = arith.constant 0 : index
    %c0_124 = arith.constant 0 : index
    %147 = vector.load %arg7[%c0_122, %c0_123, %c0_124] : memref<1x4x256xf32, #tpu.memory_space<vmem>>, vector<1x4x256xf32>
    %148 = vector.shape_cast %147 : vector<1x4x256xf32> to vector<4x256xf32>
    %149 = vector.shape_cast %146 : vector<4x256xf32> to vector<1x4x256xf32>
    tpu.vector_store %arg7[%c0_122, %c0_123, %c0_124], %149 {strides = array<i32>} : memref<1x4x256xf32, #tpu.memory_space<vmem>>, vector<1x4x256xf32>,
    return
  }
  func.func @transform_0(%arg0: i32) -> (i32, i32, i32) {
    %c0_i32 = arith.constant 0 : i32
    %c0_i32_0 = arith.constant 0 : i32
    %c0_i32_1 = arith.constant 0 : i32
    return %arg0, %c0_i32, %c0_i32_0 : i32, i32, i32
  }
  func.func @transform_1(%arg0: i32) -> (i32, i32) {
    %c0_i32 = arith.constant 0 : i32
    %c0_i32_0 = arith.constant 0 : i32
    %c0_i32_1 = arith.constant 0 : i32
    return %c0_i32, %c0_i32_0 : i32, i32
  }
  func.func @transform_2(%arg0: i32) -> (i32, i32, i32) {
    %c0_i32 = arith.constant 0 : i32
    %c0_i32_0 = arith.constant 0 : i32
    %c0_i32_1 = arith.constant 0 : i32
    %c0_i32_2 = arith.constant 0 : i32
    return %c0_i32, %c0_i32_0, %c0_i32_1 : i32, i32, i32
  }
  func.func @transform_3(%arg0: i32) -> (i32, i32) {
    %c0_i32 = arith.constant 0 : i32
    %c0_i32_0 = arith.constant 0 : i32
    %c0_i32_1 = arith.constant 0 : i32
    return %c0_i32, %c0_i32_0 : i32, i32
  }
  func.func @transform_4(%arg0: i32) -> (i32, i32, i32) {
    %c0_i32 = arith.constant 0 : i32
    %c0_i32_0 = arith.constant 0 : i32
    %c0_i32_1 = arith.constant 0 : i32
    %c0_i32_2 = arith.constant 0 : i32
    return %c0_i32, %c0_i32_0, %c0_i32_1 : i32, i32, i32
  }
  func.func @transform_5(%arg0: i32) -> (i32, i32) {
    %c0_i32 = arith.constant 0 : i32
    %c0_i32_0 = arith.constant 0 : i32
    %c0_i32_1 = arith.constant 0 : i32
    return %c0_i32, %c0_i32_0 : i32, i32
  }
  func.func @transform_6(%arg0: i32) -> (i32, i32, i32) {
    %c0_i32 = arith.constant 0 : i32
    %c0_i32_0 = arith.constant 0 : i32
    %c0_i32_1 = arith.constant 0 : i32
    return %arg0, %c0_i32, %c0_i32_0 : i32, i32, i32
  }
}

</mosaic_0001>

<bundles_post_ra>
// kernel: tpu_custom_call.1
= control target key start
LH: loop header
LB: loop body
LE: loop exit
PB: predicated region body
PF: predicated region fallthrough
CT: control target
= control target key end

     0   :  { %11 = vsyncpa [#allocation5], 0  ;;  %s10215_s0 = inlined_call_operand.vmem [shape: f32[2,4,256], index: 0, kind: input, shape index: {}]   ;;  %s10216_s1 = inlined_call_operand.vmem [shape: f32[2,256], index: 1, kind: input, shape index: {}]   ;;  %s10217_s2 = inlined_call_operand.vmem [shape: f32[9,4,4], index: 2, kind: input, shape index: {}]   ;;  %s10218_s3 = inlined_call_operand.vmem [shape: f32[4,1], index: 3, kind: input, shape index: {}]   ;;  %s10219_s4 = inlined_call_operand.vmem [shape: f32[9,4,4], index: 4, kind: input, shape index: {}]   ;;  %s10220_s5 = inlined_call_operand.vmem [shape: f32[4,1], index: 5, kind: input, shape index: {}]   ;;  %s10221_s6 = inlined_call_operand.hbm [shape: f32[2,4,256], index: 6, kind: output, shape index: {}]  }
   0x1   :  { %13 = vsyncpa [#allocation5 + $0x1], 0  ;;  %s9643_s21 = smov 0   ;;  %s9645_s22 = smov 0  }
   0x2   :  { %s9647_s23 = smov 0   ;;  %s9649_s24 = smov 0  }
   0x3 LB: > { %s9664_s25 = sadd.s32 4294967295, %s9595_s24   ;;  %s9235_s26 = sadd.s32 4294967294, %s9595_s24   ;;  %s9595_s24 = sphi %s9649_s24, %s10227_s24   ;;  %s9591_s23 = sphi %s9647_s23, %s10226_s23   ;;  %s9587_s22 = sphi %s9645_s22, %s10225_s22   ;;  %s9583_s21 = sphi %s9643_s21, %s10224_s21  }
   0x4   : > { %s9668_s27 = sadd.s32 1, %s9595_s24   ;;  %s157_s28 = sadd.s32 1, %s9591_s23 }
   0x5   : > { %s154_s29 = ssub.s32 %s9595_s24, %s9668_s27  ;;  %p167_p0 = scmp.ne.s32.totalorder %s9591_s23, %s9587_s22 }
   0x6   : > { %p155_p1 = scmp.eq.s32.totalorder %s154_s29, 0  ;;  %p168_p2 = scmp.eq.s32.totalorder %s9664_s25, 1 }
   0x7   : > { %p173_p3 = scmp.ne.s32.totalorder %s9587_s22, %s9583_s21  ;;  %p174_p4 = scmp.eq.s32.totalorder %s9235_s26, 1 }
   0x8   : > { %s9679_s30 = scalar_select %p155_p1, %s9591_s23, %s157_s28  }
   0x9   : > { %p9681_p5 = por %p168_p2, %p167_p0  ;;  %p9685_p6 = por %p174_p4, %p173_p3 }
   0xa   : > { %p9238_p7 = scmp.ge.s32.totalorder %s9595_s24, 1  ;;  %p215_p8 = scmp.lt.s32.totalorder %s9595_s24, 3 }
   0xc   : > { %p216_p9 = pnand %p9238_p7, %p215_p8 }
   0xd   : > { %v260_v0 = vlaneseq (!%p216_p9)  ;;  %p245_p10 = scmp.lt.s32.totalorder (!%p216_p9), %s9664_s25, 1  ;;  %v9597_v1 = vmov (!%p216_p9), 0.0   ;;  %v250_v3 = vld [vmem:[%s10216_s1] ss:$2 sm:$0x3] (!%p216_p9)  ;;  %s9598_s16 = smov (!%p216_p9), 111  }
   0xe   : > { %219 = sbr.rel (%p216_p9) target bundleno = 1714 (0x6b2), region = 44  ;;  %253 = vst [vmem:[#allocation2] sm:$0xf] (!%p216_p9), %v9597_v1  ;;  %254 = vst [vmem:[#allocation2 + $0xc] sm:$0xf] (!%p216_p9), %v9597_v1  ;;  %368 = vmatprep.mubr.f32.mxu0 (!%p216_p9), %v9597_v1  ;;  %4831 = vmatprep.mubr.f32.mxu1 (!%p216_p9), %v9597_v1  ;;  %s9599_s19 = smov (!%p216_p9), 16  }
   0xf   : > { %4733 = vst [vmem:[#allocation3] sm:$0xf] (!%p216_p9), %v9597_v1  ;;  %4734 = vst [vmem:[#allocation3 + $0xc] sm:$0xf] (!%p216_p9), %v9597_v1  ;;  %v261_v2 = vshrl.u32 (!%p216_p9), %v260_v0, 7  ;;  %s9600_s20 = smov (!%p216_p9), 113  }
  0x10   : > { %v9242_v10 = vld [vmem:[%s10216_s1 + $0x1] ss:$2 sm:$0x3] (!%p216_p9)  ;;  %v9243_v17 = vld [vmem:[%s10217_s2 + $0x4] sm:$0xf] (!%p216_p9)  ;;  %vm293_vm0 = vcmask (!%p216_p9), 31744  }
  0x11   : > { %v262_v4 = vsub.s32 (!%p216_p9), 0, %v261_v2  ;;  %v266_v5 = vsub.s32 (!%p216_p9), 1, %v261_v2  ;;  %v295_v18 = vsel (!%p216_p9), %vm293_vm0, %v9243_v17, 0  ;;  %vm272_vm1 = vcmask (!%p216_p9), 908288   ;;  %s9601_s29 = smov (!%p216_p9), 17   ;;  %s9603_s10 = smov (!%p216_p9), 15  }
  0x12   : > { %v9734_v19 = vand.u32 (!%p216_p9), 4294901760, %v295_v18  ;;  %vm290_vm2 = vcmask (!%p216_p9), 130048   ;;  %vm297_vm3 = vcmask (!%p216_p9), 1043456   ;;  %vm1266_vm4 = vcmask (!%p216_p9), 924672   ;;  %v278_v54 = vld [vmem:[%s10217_s2] sm:$0xf] (!%p216_p9) }
  0x13   : > { %v263_v6 = vrot.slane (!%p216_p9), %v250_v3, %v262_v4  ;;  %v267_v7 = vrot.slane (!%p216_p9), %v250_v3, %v266_v5  ;;  %v1257_v11 = vrot.slane (!%p216_p9), %v9242_v10, %v262_v4  ;;  %v1261_v12 = vrot.slane (!%p216_p9), %v9242_v10, %v266_v5  ;;  %s9604_s13 = smov (!%p216_p9), 1   ;;  %s9605_s28 = smov (!%p216_p9), 112  }
  0x14   : > { %v9737_v20 = vsub.f32 (!%p216_p9), %v295_v18, %v9734_v19  ;;  %v780_v55 = vsel (!%p216_p9), %vm293_vm0, %v278_v54, 0  ;;  %vm776_vm5 = vcmask (!%p216_p9), 138240   ;;  %vm1765_vm6 = vcmask (!%p216_p9), 1039360   ;;  %s9265_s11 = sshll.u32 (!%p216_p9), %s9664_s25, 7 }
  0x15   : > { %s246_s9 = scalar_select %p245_p10, %s9664_s25, 1  ;;  %v9711_v9 = vcombine.low %v263_v6, %v267_v7  ;;  %v9724_v16 = vcombine.low %v1257_v11, %v1261_v12  ;;  %v9785_v56 = vand.u32 4294901760, %v780_v55  ;;  %vm1283_vm7 = vcmask 121856  }
  0x16   : > { %v371_v25 = vand.u32 4294901760, %v9737_v20  ;;  %vm1782_vm8 = vcmask 7168   ;;  %vm3745_vm9 = vcmask 916480   ;;  %s10173_s18 = scalar_lea.hbm %s10221_s6, %s9265_s11  ;;  %s9607_s25 = smov [#allocation4]  }
  0x17   : > { %s9264_s12 = sshll.u32 %s246_s9, 3  ;;  %269 = vrot.lane.b32.xlu0 %v9711_v9, %s9598_s16  ;;  %s9602_s9 = smov 127   ;;  %v854_v57 = vsub.f32 %v780_v55, %v9785_v56 }
  0x18   : > { %s9705_s15 = scalar_lea.vmem %s10215_s0, %s9264_s12  ;;  %v372_v30 = vsub.f32 %v9737_v20, %v371_v25 }
  0x19   : > { %v9708_v8 = vld [vmem:[%s9705_s15] sm:$0xff]  ;;  %v855_v59 = vand.u32 4294901760, %v854_v57 }
  0x1a   : > { %256 = vst [vmem:[#allocation2 + $0x4] sm:$0xff] %v9708_v8  ;;  %v373_v38 = vand.u32 4294901760, %v372_v30 }
  0x1b   : > { %v856_v3 = vsub.f32 %v854_v57, %v855_v59 }
  0x21   : > { %v9718_v13 = vld [vmem:[#allocation2] sm:$0xff]  ;;  %v258_v14 = vld [vmem:[#allocation2 + $0x8] sm:$0xf] }
  0x22   : > { %v283_v15 = vcombine.high %v9718_v13, %v9718_v13  ;;  %288 = vrot.lane.b32.xlu1 %v258_v14, %s9599_s19  ;;  %v1252_v39 = vld [vmem:[#allocation2 + $0x8] sm:$0xf] }
  0x23   : > { %v1761_v63 = vld [vmem:[#allocation2 + $0x8] sm:$0xf] }
  0x24   : > { %286 = vrot.lane.b32.xlu0 %v283_v15, %s9599_s19  ;;  %v857_v15 = vand.u32 4294901760, %v856_v3 }
  0x26   : > { %284 = vrot.lane.b32.xlu1 %v9718_v13, %s9599_s19 }
  0x28   : > { %1263 = vrot.lane.b32.xlu0 %v9724_v16, %s9600_s20 }
  0x89   : > { %v270_v21 = vpop.permute.xlu0 %269 }
  0x8a   : > { %v9739_v22 = vrot.slane %v270_v21, 4 }
  0x8c   : > { %v9743_v23 = vsel %vm272_vm1, %v9739_v22, %v270_v21  ;;  %v277_v24 = vmul.f32 %v9739_v22, %v258_v14 }
  0x8d   : > { %v276_v26 = vmul.f32 %v9743_v23, %v9718_v13 }
  0x8e   : > { %774 = vrot.lane.b32.xlu0 %v277_v24, %s9601_s29 }
  0x8f   : > { %v769_v28 = vcombine.high %v276_v26, %v276_v26 }
  0x91   : > { %772 = vrot.lane.b32.xlu1 %v769_v28, %s9601_s29 }
  0x92   : > { %1762 = vrot.lane.b32.xlu0 %v9711_v9, %s9602_s9 }
  0x94   : > { %v289_v27 = vpop.permute.xlu1 %288 }
  0x95   : > { %770 = vrot.lane.b32.xlu1 %v276_v26, %s9601_s29 }
  0x96   : > { %v287_v29 = vpop.permute.xlu0 %286 }
  0x97   : > { %v292_v31 = vsel %vm290_vm2, %v287_v29, %v289_v27 }
  0x98   : > { %v300_v32 = vsel %vm297_vm3, %v292_v31, 0  ;;  %v285_v33 = vpop.permute.xlu1 %284 }
  0x99   : > { %v302_v34 = vand.u32 4294901760, %v300_v32  ;;  %v291_v35 = vsel %vm290_vm2, %v285_v33, %v287_v29 }
  0x9a   : > { %v1264_v36 = vpop.permute.xlu0 %1263  ;;  %v298_v37 = vsel %vm297_vm3, %v291_v35, 0 }
  0x9b   : > { %v381_v40 = vsub.f32 %v300_v32, %v302_v34  ;;  %v9759_v41 = vrot.slane %v1264_v36, 4  ;;  %v304_v42 = vand.u32 4294901760, %v298_v37  ;;  %303 = vmatprep.subr.mxu0 %v302_v34  ;;  %v9244_v32 = vld [vmem:[%s10217_s2 + $0x8] sm:$0xf] }
  0x9d   : > { %v9763_v43 = vsel %vm1266_vm4, %v9759_v41, %v1264_v36  ;;  %v387_v44 = vsub.f32 %v298_v37, %v304_v42  ;;  %305 = vmatpush1.msra.mxu0 %v304_v42  ;;  %v1271_v45 = vmul.f32 %v9759_v41, %v1252_v39  ;;  %v382_v46 = vand.u32 4294901760, %v381_v40 }
  0x9e   : > { %v1270_v47 = vmul.f32 %v9763_v43, %v9718_v13  ;;  %374 = vmatmul.mubr.f32.vlgmr.msra.gmra.mrb[0].mxu0 %v373_v38 }
  0x9f   : > { %v388_v48 = vand.u32 4294901760, %v387_v44  ;;  %1281 = vrot.lane.b32.xlu0 %v1271_v45, %s9603_s10  ;;  %v383_v49 = vsub.f32 %v381_v40, %v382_v46  ;;  %454 = vmatprep.mubr.f32.mxu0 %v9597_v1 }
  0xa0   : > { %v1276_v50 = vcombine.high %v1270_v47, %v1270_v47 }
  0xa1   : > { %v384_v51 = vand.u32 4294901760, %v383_v49  ;;  %v389_v52 = vsub.f32 %v387_v44, %v388_v48 }
  0xa2   : > { %1279 = vrot.lane.b32.xlu1 %v1276_v50, %s9603_s10 }
  0xa3   : > { %385 = vmatprep.subr.mxu0 %v384_v51  ;;  %v390_v53 = vand.u32 4294901760, %v389_v52  ;;  %v9245_v52 = vld [vmem:[%s10217_s2 + $0xc] sm:$0xf] }
  0xa5   : > { %391 = vmatpush1.msra.mxu0 %v390_v53  ;;  %v1786_v53 = vsel %vm293_vm0, %v9245_v52, 0 }
  0xa6   : > { %1277 = vrot.lane.b32.xlu1 %v1270_v47, %s9603_s10  ;;  %456 = vmatmul.mubr.f32.vlgmr.msra.gmra.mrb[0].mxu0 %v9734_v19  ;;  %v9835_v54 = vand.u32 4294901760, %v1786_v53 }
  0xa7   : > { %464 = vmatprep.subr.mxu0 %v381_v40  ;;  %530 = vmatprep.mubr.f32.mxu0 %v9597_v1 }
  0xa8   : > { %467 = vmatpush1.msra.mxu0 %v387_v44  ;;  %v9838_v55 = vsub.f32 %v1786_v53, %v9835_v54 }
  0xa9   : > { %540 = vmatprep.subr.mxu0 %v302_v34 }
  0xae   : > { %533 = vmatmul.mubr.f32.vlgmr.msra.gmra.mrb[0].mxu0 %v9737_v20 }
  0xaf   : > { %542 = vmatpush1.msra.mxu0 %v304_v42  ;;  %605 = vmatprep.mubr.f32.mxu0 %v9597_v1 }
  0xb0   : > { %618 = vmatprep.subr.mxu0 %v382_v46 }
  0xb6   : > { %609 = vmatmul.mubr.f32.vlgmr.msra.gmra.mrb[0].mxu0 %v371_v25 }
  0xb7   : > { %622 = vmatpush1.msra.mxu0 %v388_v48  ;;  %685 = vmatprep.mubr.f32.mxu0 %v9597_v1 }
  0xb8   : > { %694 = vmatprep.subr.mxu0 %v302_v34  ;;  %v1287_v34 = vsel %vm293_vm0, %v9244_v32, 0 }
  0xb9   : > { %v1360_v37 = vand.u32 4294901760, %v1287_v34 }
  0xbb   : > { %v1361_v40 = vsub.f32 %v1287_v34, %v1360_v37  ;;  %v3733_v34 = vld [vmem:[#allocation2 + $0xc] sm:$0xf] }
  0xbd   : > { %v1362_v45 = vand.u32 4294901760, %v1361_v40 }
  0xbe   : > { %687 = vmatmul.mubr.f32.vlgmr.msra.gmra.mrb[0].mxu0 %v9734_v19 }
  0xbf   : > { %696 = vmatpush1.msra.mxu0 %v304_v42  ;;  %759 = vmatprep.mubr.f32.mxu0 %v9597_v1  ;;  %v1363_v48 = vsub.f32 %v1361_v40, %v1362_v45 }
  0xc1   : > { %v1364_v50 = vand.u32 4294901760, %v1363_v48 }
  0xc6   : > { %761 = vmatmul.mubr.f32.vlgmr.msra.gmra.mrb[0].mxu0 %v9734_v19 }
  0xc7   : > { %852 = vmatprep.mubr.f32.mxu0 %v9597_v1 }
 0x100   : > { %v775_v58 = vpop.permute.xlu0 %774 }
 0x103   : > { %v773_v60 = vpop.permute.xlu1 %772 }
 0x104   : > { %v778_v61 = vsel %vm776_vm5, %v773_v60, %v775_v58  ;;  %v1763_v62 = vpop.permute.xlu0 %1762 }
 0x105   : > { %v784_v0 = vsel %vm297_vm3, %v778_v61, 0  ;;  %v9790_v2 = vrot.slane %v1763_v62, 4  ;;  %v2739_v61 = vld [vmem:[#allocation2 + $0xc] sm:$0xf] }
 0x106   : > { %v786_v4 = vand.u32 4294901760, %v784_v0 }
 0x107   : > { %v9794_v5 = vsel %vm1765_vm6, %v9790_v2, %v1763_v62  ;;  %v771_v6 = vpop.permute.xlu1 %770  ;;  %v1770_v7 = vmul.f32 %v9790_v2, %v1761_v63 }
 0x108   : > { %v865_v10 = vsub.f32 %v784_v0, %v786_v4  ;;  %v1769_v11 = vmul.f32 %v9794_v5, %v9718_v13  ;;  %v777_v12 = vsel %vm776_vm5, %v771_v6, %v773_v60  ;;  %787 = vmatprep.subr.mxu0 %v786_v4 }
 0x109   : > { %v782_v14 = vsel %vm297_vm3, %v777_v12, 0  ;;  %1780 = vrot.lane.b32.xlu1 %v1770_v7, %s9604_s13 }
 0x10a   : > { %v788_v17 = vand.u32 4294901760, %v782_v14  ;;  %v1775_v18 = vcombine.high %v1769_v11, %v1769_v11  ;;  %v866_v19 = vand.u32 4294901760, %v865_v10 }
 0x10c   : > { %v871_v20 = vsub.f32 %v782_v14, %v788_v17  ;;  %1778 = vrot.lane.b32.xlu0 %v1775_v18, %s9604_s13  ;;  %789 = vmatpush1.msra.mxu0 %v788_v17  ;;  %v867_v21 = vsub.f32 %v865_v10, %v866_v19 }
 0x10d   : > { %2740 = vrot.lane.b32.xlu1 %v9724_v16, %s9604_s13  ;;  %858 = vmatmul.mubr.f32.vlgmr.msra.gmra.mrb[0].mxu0 %v857_v15 }
 0x10e   : > { %v872_v13 = vand.u32 4294901760, %v871_v20  ;;  %v868_v24 = vand.u32 4294901760, %v867_v21  ;;  %938 = vmatprep.mubr.f32.mxu0 %v9597_v1 }
 0x110   : > { %1776 = vrot.lane.b32.xlu0 %v1769_v11, %s9604_s13  ;;  %869 = vmatprep.subr.mxu0 %v868_v24  ;;  %v873_v25 = vsub.f32 %v871_v20, %v872_v13 }
 0x111   : > { %v1282_v27 = vpop.permute.xlu0 %1281 }
 0x112   : > { %v874_v26 = vand.u32 4294901760, %v873_v25  ;;  %v3236_v25 = vld [vmem:[#allocation2 + $0xc] sm:$0xf] }
 0x114   : > { %875 = vmatpush1.msra.mxu0 %v874_v26  ;;  %3237 = vrot.lane.b32.xlu0 %v9711_v9, %s9603_s10  ;;  %v1280_v28 = vpop.permute.xlu1 %1279 }
 0x115   : > { %940 = vmatmul.mubr.f32.vlgmr.msra.gmra.mrb[0].mxu0 %v9785_v56  ;;  %948 = vmatprep.subr.mxu0 %v865_v10  ;;  %v1285_v29 = vsel %vm1283_vm7, %v1280_v28, %v1282_v27 }
 0x116   : > { %951 = vmatpush1.msra.mxu0 %v871_v20  ;;  %1014 = vmatprep.mubr.f32.mxu0 %v9597_v1  ;;  %v1291_v30 = vsel %vm297_vm3, %v1285_v29, 0 }
 0x117   : > { %1024 = vmatprep.subr.mxu0 %v786_v4  ;;  %v1293_v31 = vand.u32 4294901760, %v1291_v30 }
 0x118   : > { %v1278_v9 = vpop.permute.xlu1 %1277 }
 0x119   : > { %v1284_v33 = vsel %vm1283_vm7, %v1278_v9, %v1280_v28  ;;  %v1372_v35 = vsub.f32 %v1291_v30, %v1293_v31 }
 0x11a   : > { %v1289_v36 = vsel %vm297_vm3, %v1284_v33, 0  ;;  %v2263_v33 = vcombine.high %v9708_v8, %v9708_v8 }
 0x11b   : > { %v1295_v38 = vand.u32 4294901760, %v1289_v36  ;;  %v1373_v39 = vand.u32 4294901760, %v1372_v35 }
 0x11d   : > { %1017 = vmatmul.mubr.f32.vlgmr.msra.gmra.mrb[0].mxu0 %v854_v57  ;;  %v1378_v42 = vsub.f32 %v1289_v36, %v1295_v38  ;;  %v1374_v44 = vsub.f32 %v1372_v35, %v1373_v39  ;;  %v1861_v57 = vand.u32 4294901760, %v9838_v55  ;;  %v9246_v36 = vld [vmem:[%s10217_s2 + $0x10] sm:$0xf] }
 0x11e   : > { %1026 = vmatpush1.msra.mxu0 %v788_v17  ;;  %1089 = vmatprep.mubr.f32.mxu0 %v9597_v1 }
 0x11f   : > { %1102 = vmatprep.subr.mxu0 %v866_v19  ;;  %v1379_v46 = vand.u32 4294901760, %v1378_v42  ;;  %v1375_v47 = vand.u32 4294901760, %v1374_v44  ;;  %v1862_v0 = vsub.f32 %v9838_v55, %v1861_v57 }
 0x121   : > { %v1380_v49 = vsub.f32 %v1378_v42, %v1379_v46  ;;  %v1863_v15 = vand.u32 4294901760, %v1862_v0 }
 0x123   : > { %v1381_v51 = vand.u32 4294901760, %v1380_v49 }
 0x125   : > { %1093 = vmatmul.mubr.f32.vlgmr.msra.gmra.mrb[0].mxu0 %v855_v59 }
 0x126   : > { %1106 = vmatpush1.msra.mxu0 %v872_v13  ;;  %1169 = vmatprep.mubr.f32.mxu0 %v9597_v1 }
 0x127   : > { %1178 = vmatprep.subr.mxu0 %v786_v4 }
 0x12d   : > { %1171 = vmatmul.mubr.f32.vlgmr.msra.gmra.mrb[0].mxu0 %v9785_v56 }
 0x12e   : > { %1180 = vmatpush1.msra.mxu0 %v788_v17  ;;  %1243 = vmatprep.mubr.f32.mxu0 %v9597_v1 }
 0x12f   : > { %1294 = vmatprep.subr.mxu0 %v1293_v31 }
 0x135   : > { %1245 = vmatmul.mubr.f32.vlgmr.msra.gmra.mrb[0].mxu0 %v9785_v56 }
 0x136   : > { %1296 = vmatpush1.msra.mxu0 %v1295_v38  ;;  %1359 = vmatprep.mubr.f32.mxu0 %v9597_v1 }
 0x137   : > { %1376 = vmatprep.subr.mxu0 %v1375_v47 }
 0x13d   : > { %1365 = vmatmul.mubr.f32.vlgmr.msra.gmra.mrb[0].mxu0 %v1364_v50 }
 0x13e   : > { %1382 = vmatpush1.msra.mxu0 %v1381_v51  ;;  %1445 = vmatprep.mubr.f32.mxu0 %v9597_v1 }
 0x13f   : > { %1455 = vmatprep.subr.mxu0 %v1372_v35 }
 0x145   : > { %1447 = vmatmul.mubr.f32.vlgmr.msra.gmra.mrb[0].mxu0 %v1360_v37 }
 0x146   : > { %1458 = vmatpush1.msra.mxu0 %v1378_v42  ;;  %1521 = vmatprep.mubr.f32.mxu0 %v9597_v1 }
 0x147   : > { %1531 = vmatprep.subr.mxu0 %v1293_v31 }
 0x14d   : > { %1524 = vmatmul.mubr.f32.vlgmr.msra.gmra.mrb[0].mxu0 %v1361_v40 }
 0x14e   : > { %1533 = vmatpush1.msra.mxu0 %v1295_v38  ;;  %1596 = vmatprep.mubr.f32.mxu0 %v9597_v1 }
 0x14f   : > { %1609 = vmatprep.subr.mxu0 %v1373_v39 }
 0x155   : > { %1600 = vmatmul.mubr.f32.vlgmr.msra.gmra.mrb[0].mxu0 %v1362_v45 }
 0x156   : > { %1613 = vmatpush1.msra.mxu0 %v1379_v46  ;;  %1676 = vmatprep.mubr.f32.mxu0 %v9597_v1 }
 0x157   : > { %1685 = vmatprep.subr.mxu0 %v1293_v31 }
 0x15d   : > { %1678 = vmatmul.mubr.f32.vlgmr.msra.gmra.mrb[0].mxu0 %v1360_v37 }
 0x15e   : > { %1687 = vmatpush1.msra.mxu0 %v1295_v38  ;;  %1750 = vmatprep.mubr.f32.mxu0 %v9597_v1  ;;  %v2267_v38 = vsel %vm297_vm3, %v9708_v8, 0 }
 0x15f   : > { %v2273_v42 = vand.u32 4294901760, %v2267_v38 }
 0x161   : > { %v2356_v46 = vsub.f32 %v2267_v38, %v2273_v42 }
 0x163   : > { %v2357_v49 = vand.u32 4294901760, %v2356_v46 }
 0x165   : > { %1752 = vmatmul.mubr.f32.vlgmr.msra.gmra.mrb[0].mxu0 %v1360_v37  ;;  %v2265_v37 = vsel %vm293_vm0, %v9246_v36, 0  ;;  %v2358_v52 = vsub.f32 %v2356_v46, %v2357_v49  ;;  %v9248_v36 = vld [vmem:[%s10217_s2 + $0x18] sm:$0xf] }
 0x166   : > { %1858 = vmatprep.mubr.f32.mxu0 %v9597_v1  ;;  %v2338_v40 = vand.u32 4294901760, %v2265_v37 }
 0x168   : > { %v2339_v45 = vsub.f32 %v2265_v37, %v2338_v40 }
 0x16a   : > { %v2340_v48 = vand.u32 4294901760, %v2339_v45 }
 0x16c   : > { %v2341_v51 = vsub.f32 %v2339_v45, %v2340_v48 }
 0x16e   : > { %v2342_v53 = vand.u32 4294901760, %v2341_v51 }
 0x17b   : > { %v1781_v56 = vpop.permute.xlu1 %1780 }
 0x17e   : > { %v1779_v58 = vpop.permute.xlu0 %1778 }
 0x17f   : > { %v1784_v59 = vsel %vm1782_vm8, %v1779_v58, %v1781_v56  ;;  %v2741_v60 = vpop.permute.xlu1 %2740 }
 0x180   : > { %v1790_v62 = vsel %vm297_vm3, %v1784_v59, 0  ;;  %v9843_v63 = vrot.slane %v2741_v60, 4 }
 0x181   : > { %v1792_v3 = vand.u32 4294901760, %v1790_v62 }
 0x182   : > { %v9850_v4 = vsel %vm1782_vm8, %v9843_v63, %v2741_v60  ;;  %v1777_v6 = vpop.permute.xlu0 %1776  ;;  %v2747_v7 = vmul.f32 %v9843_v63, %v2739_v61 }
 0x183   : > { %v1871_v10 = vsub.f32 %v1790_v62, %v1792_v3  ;;  %v2746_v11 = vmul.f32 %v9850_v4, %v9708_v8  ;;  %v1783_v12 = vsel %vm1782_vm8, %v1777_v6, %v1779_v58  ;;  %1793 = vmatprep.subr.mxu0 %v1792_v3 }
 0x184   : > { %v1788_v14 = vsel %vm297_vm3, %v1783_v12, 0  ;;  %2757 = vrot.lane.b32.xlu0 %v2747_v7, %s9602_s9 }
 0x185   : > { %v1794_v17 = vand.u32 4294901760, %v1788_v14  ;;  %v2752_v18 = vcombine.high %v2746_v11, %v2746_v11  ;;  %v1872_v19 = vand.u32 4294901760, %v1871_v10 }
 0x186   : > { %v3238_v20 = vpop.permute.xlu0 %3237 }
 0x187   : > { %v1877_v21 = vsub.f32 %v1788_v14, %v1794_v17  ;;  %1795 = vmatpush1.msra.mxu0 %v1794_v17  ;;  %2755 = vrot.lane.b32.xlu1 %v2752_v18, %s9602_s9  ;;  %v9859_v13 = vrot.slane %v3238_v20, 4  ;;  %v1873_v24 = vsub.f32 %v1871_v10, %v1872_v19 }
 0x188   : > { %1864 = vmatmul.mubr.f32.vlgmr.msra.gmra.mrb[0].mxu0 %v1863_v15 }
 0x189   : > { %v1878_v26 = vand.u32 4294901760, %v1877_v21  ;;  %v9863_v27 = vsel %vm1283_vm7, %v9859_v13, %v3238_v20  ;;  %v1874_v28 = vand.u32 4294901760, %v1873_v24  ;;  %1944 = vmatprep.mubr.f32.mxu0 %v9597_v1  ;;  %v3244_v9 = vmul.f32 %v9859_v13, %v3236_v25 }
 0x18a   : > { %v3243_v29 = vmul.f32 %v9863_v27, %v9708_v8 }
 0x18b   : > { %1875 = vmatprep.subr.mxu0 %v1874_v28  ;;  %2753 = vrot.lane.b32.xlu1 %v2746_v11, %s9602_s9  ;;  %v1879_v30 = vsub.f32 %v1877_v21, %v1878_v26 }
 0x18c   : > { %v3249_v31 = vcombine.high %v3243_v29, %v3243_v29 }
 0x18d   : > { %v1880_v32 = vand.u32 4294901760, %v1879_v30 }
 0x18e   : > { %3252 = vrot.lane.b32.xlu0 %v3249_v31, %s9600_s20 }
 0x18f   : > { %1881 = vmatpush1.msra.mxu0 %v1880_v32  ;;  %3254 = vrot.lane.b32.xlu1 %v3244_v9, %s9600_s20 }
 0x190   : > { %1946 = vmatmul.mubr.f32.vlgmr.msra.gmra.mrb[0].mxu0 %v9835_v54  ;;  %1954 = vmatprep.subr.mxu0 %v1871_v10 }
 0x191   : > { %1957 = vmatpush1.msra.mxu0 %v1877_v21  ;;  %2020 = vmatprep.mubr.f32.mxu0 %v9597_v1 }
 0x192   : > { %2030 = vmatprep.subr.mxu0 %v1792_v3  ;;  %3250 = vrot.lane.b32.xlu0 %v3243_v29, %s9600_s20 }
 0x193   : > { %4224 = vrot.lane.b32.xlu1 %v9724_v16, %s9601_s29  ;;  %v2269_v16 = vsel %vm297_vm3, %v2263_v33, 0 }
 0x194   : > { %v2271_v35 = vand.u32 4294901760, %v2269_v16 }
 0x196   : > { %3741 = vrot.lane.b32.xlu0 %v2263_v33, %s9605_s28  ;;  %v2350_v39 = vsub.f32 %v2269_v16, %v2271_v35 }
 0x197   : > { %3743 = vrot.lane.b32.xlu1 %v3733_v34, %s9605_s28 }
 0x198   : > { %2023 = vmatmul.mubr.f32.vlgmr.msra.gmra.mrb[0].mxu0 %v9838_v55  ;;  %v2351_v44 = vand.u32 4294901760, %v2350_v39  ;;  %v2359_v55 = vand.u32 4294901760, %v2358_v52 }
 0x199   : > { %2032 = vmatpush1.msra.mxu0 %v1794_v17  ;;  %2095 = vmatprep.mubr.f32.mxu0 %v9597_v1 }
 0x19a   : > { %2108 = vmatprep.subr.mxu0 %v1872_v19  ;;  %3739 = vrot.lane.b32.xlu0 %v9708_v8, %s9605_s28  ;;  %v2352_v47 = vsub.f32 %v2350_v39, %v2351_v44 }
 0x19c   : > { %v2353_v50 = vand.u32 4294901760, %v2352_v47 }
 0x1a0   : > { %2099 = vmatmul.mubr.f32.vlgmr.msra.gmra.mrb[0].mxu0 %v1861_v57 }
 0x1a1   : > { %2112 = vmatpush1.msra.mxu0 %v1878_v26  ;;  %2175 = vmatprep.mubr.f32.mxu0 %v9597_v1  ;;  %v4223_v26 = vld [vmem:[#allocation2 + $0xc] sm:$0xf] }
 0x1a2   : > { %2184 = vmatprep.subr.mxu0 %v1792_v3 }
 0x1a8   : > { %2177 = vmatmul.mubr.f32.vlgmr.msra.gmra.mrb[0].mxu0 %v9835_v54 }
 0x1a9   : > { %2186 = vmatpush1.msra.mxu0 %v1794_v17  ;;  %2249 = vmatprep.mubr.f32.mxu0 %v9597_v1 }
 0x1aa   : > { %2272 = vmatprep.subr.mxu0 %v2271_v35 }
 0x1b0   : > { %2251 = vmatmul.mubr.f32.vlgmr.msra.gmra.mrb[0].mxu0 %v9835_v54  ;;  %v9247_v54 = vld [vmem:[%s10217_s2 + $0x14] sm:$0xf] }
 0x1b1   : > { %2274 = vmatpush1.msra.mxu0 %v2273_v42  ;;  %2337 = vmatprep.mubr.f32.mxu0 %v9597_v1  ;;  %v2762_v56 = vsel %vm293_vm0, %v9247_v54, 0 }
 0x1b2   : > { %2354 = vmatprep.subr.mxu0 %v2353_v50  ;;  %v9909_v57 = vand.u32 4294901760, %v2762_v56 }
 0x1b4   : > { %v2836_v58 = vsub.f32 %v2762_v56, %v9909_v57 }
 0x1b6   : > { %v2837_v59 = vand.u32 4294901760, %v2836_v58 }
 0x1b8   : > { %2343 = vmatmul.mubr.f32.vlgmr.msra.gmra.mrb[0].mxu0 %v2342_v53  ;;  %v2838_v3 = vsub.f32 %v2836_v58, %v2837_v59 }
 0x1b9   : > { %2360 = vmatpush1.msra.mxu0 %v2359_v55  ;;  %2423 = vmatprep.mubr.f32.mxu0 %v9597_v1 }
 0x1ba   : > { %2433 = vmatprep.subr.mxu0 %v2350_v39  ;;  %v2839_v14 = vand.u32 4294901760, %v2838_v3  ;;  %v3259_v39 = vsel %vm293_vm0, %v9248_v36, 0 }
 0x1c0   : > { %2425 = vmatmul.mubr.f32.vlgmr.msra.gmra.mrb[0].mxu0 %v2338_v40 }
 0x1c1   : > { %2436 = vmatpush1.msra.mxu0 %v2356_v46  ;;  %2499 = vmatprep.mubr.f32.mxu0 %v9597_v1 }
 0x1c2   : > { %2509 = vmatprep.subr.mxu0 %v2271_v35 }
 0x1c8   : > { %2502 = vmatmul.mubr.f32.vlgmr.msra.gmra.mrb[0].mxu0 %v2339_v45 }
 0x1c9   : > { %2511 = vmatpush1.msra.mxu0 %v2273_v42  ;;  %2574 = vmatprep.mubr.f32.mxu0 %v9597_v1 }
 0x1ca   : > { %2587 = vmatprep.subr.mxu0 %v2351_v44  ;;  %v9941_v44 = vand.u32 4294901760, %v3259_v39 }
 0x1cc   : > { %v3333_v47 = vsub.f32 %v3259_v39, %v9941_v44 }
 0x1ce   : > { %v3334_v50 = vand.u32 4294901760, %v3333_v47 }
 0x1d0   : > { %2578 = vmatmul.mubr.f32.vlgmr.msra.gmra.mrb[0].mxu0 %v2340_v48  ;;  %v3335_v53 = vsub.f32 %v3333_v47, %v3334_v50 }
 0x1d1   : > { %2591 = vmatpush1.msra.mxu0 %v2357_v49  ;;  %2654 = vmatprep.mubr.f32.mxu0 %v9597_v1 }
 0x1d2   : > { %2663 = vmatprep.subr.mxu0 %v2271_v35  ;;  %v3336_v54 = vand.u32 4294901760, %v3335_v53 }
 0x1d8   : > { %2656 = vmatmul.mubr.f32.vlgmr.msra.gmra.mrb[0].mxu0 %v2338_v40 }
 0x1d9   : > { %2665 = vmatpush1.msra.mxu0 %v2273_v42  ;;  %2728 = vmatprep.mubr.f32.mxu0 %v9597_v1 }
 0x1e0   : > { %2730 = vmatmul.mubr.f32.vlgmr.msra.gmra.mrb[0].mxu0 %v2338_v40 }
 0x1e1   : > { %2834 = vmatprep.mubr.f32.mxu0 %v9597_v1 }
 0x1f6   : > { %v2758_v60 = vpop.permute.xlu0 %2757 }
 0x1f9   : > { %v2756_v61 = vpop.permute.xlu1 %2755 }
 0x1fa   : > { %v2760_v62 = vsel %vm1765_vm6, %v2756_v61, %v2758_v60 }
 0x1fb   : > { %v2766_v0 = vsel %vm297_vm3, %v2760_v62, 0 }
 0x1fc   : > { %v2768_v6 = vand.u32 4294901760, %v2766_v0 }
 0x1fd   : > { %v2754_v7 = vpop.permute.xlu1 %2753 }
 0x1fe   : > { %v2847_v10 = vsub.f32 %v2766_v0, %v2768_v6  ;;  %v2759_v11 = vsel %vm1765_vm6, %v2754_v7, %v2756_v61  ;;  %2769 = vmatprep.subr.mxu0 %v2768_v6 }
 0x1ff   : > { %v2764_v12 = vsel %vm297_vm3, %v2759_v11, 0 }
 0x200   : > { %v2770_v15 = vand.u32 4294901760, %v2764_v12  ;;  %v2848_v17 = vand.u32 4294901760, %v2847_v10  ;;  %v3253_v34 = vpop.permute.xlu0 %3252 }
 0x201   : > { %v3255_v18 = vpop.permute.xlu1 %3254 }
 0x202   : > { %v2853_v19 = vsub.f32 %v2764_v12, %v2770_v15  ;;  %2771 = vmatpush1.msra.mxu0 %v2770_v15  ;;  %v2849_v20 = vsub.f32 %v2847_v10, %v2848_v17 }
 0x203   : > { %2840 = vmatmul.mubr.f32.vlgmr.msra.gmra.mrb[0].mxu0 %v2839_v14 }
 0x204   : > { %v2854_v21 = vand.u32 4294901760, %v2853_v19  ;;  %v2850_v24 = vand.u32 4294901760, %v2849_v20  ;;  %2920 = vmatprep.mubr.f32.mxu0 %v9597_v1  ;;  %v3251_v35 = vpop.permute.xlu0 %3250 }
 0x205   : > { %v4225_v25 = vpop.permute.xlu1 %4224  ;;  %v3256_v38 = vsel %vm1266_vm4, %v3251_v35, %v3253_v34 }
 0x206   : > { %v9917_v28 = vrot.slane %v4225_v25, 4  ;;  %2851 = vmatprep.subr.mxu0 %v2850_v24  ;;  %v2855_v29 = vsub.f32 %v2853_v19, %v2854_v21  ;;  %v3261_v42 = vsel %vm297_vm3, %v3256_v38, 0 }
 0x207   : > { %v3267_v45 = vand.u32 4294901760, %v3261_v42 }
 0x208   : > { %v9921_v30 = vsel %vm776_vm5, %v9917_v28, %v4225_v25  ;;  %v2856_v9 = vand.u32 4294901760, %v2855_v29  ;;  %v4231_v31 = vmul.f32 %v9917_v28, %v4223_v26  ;;  %v3742_v60 = vpop.permute.xlu0 %3741 }
 0x209   : > { %v4230_v32 = vmul.f32 %v9921_v30, %v9708_v8  ;;  %v3257_v8 = vsel %vm1266_vm4, %v3253_v34, %v3255_v18  ;;  %v3350_v48 = vsub.f32 %v3261_v42, %v3267_v45 }
 0x20a   : > { %2857 = vmatpush1.msra.mxu0 %v2856_v9  ;;  %4241 = vrot.lane.b32.xlu0 %v4231_v31, %s9598_s16  ;;  %v3263_v16 = vsel %vm297_vm3, %v3257_v8, 0 }
 0x20b   : > { %2922 = vmatmul.mubr.f32.vlgmr.msra.gmra.mrb[0].mxu0 %v9909_v57  ;;  %2930 = vmatprep.subr.mxu0 %v2847_v10  ;;  %v4236_v33 = vcombine.high %v4230_v32, %v4230_v32  ;;  %v3265_v37 = vand.u32 4294901760, %v3263_v16  ;;  %v3351_v51 = vand.u32 4294901760, %v3350_v48 }
 0x20c   : > { %2933 = vmatpush1.msra.mxu0 %v2853_v19  ;;  %2996 = vmatprep.mubr.f32.mxu0 %v9597_v1  ;;  %v3740_v0 = vpop.permute.xlu0 %3739 }
 0x20d   : > { %3006 = vmatprep.subr.mxu0 %v2768_v6  ;;  %4239 = vrot.lane.b32.xlu1 %v4236_v33, %s9598_s16  ;;  %v3344_v40 = vsub.f32 %v3263_v16, %v3265_v37  ;;  %v3352_v55 = vsub.f32 %v3350_v48, %v3351_v51  ;;  %v3746_v7 = vsel %vm3745_vm9, %v3740_v0, %v3742_v60 }
 0x20e   : > { %v3751_v11 = vsel %vm297_vm3, %v3746_v7, 0 }
 0x20f   : > { %v3345_v46 = vand.u32 4294901760, %v3344_v40  ;;  %v3353_v56 = vand.u32 4294901760, %v3352_v55 }
 0x211   : > { %4237 = vrot.lane.b32.xlu1 %v4230_v32, %s9598_s16  ;;  %v3346_v49 = vsub.f32 %v3344_v40, %v3345_v46  ;;  %v9250_v32 = vld [vmem:[%s10217_s2 + $0x20] sm:$0xf] }
 0x212   : > { %v4246_v33 = vsel %vm293_vm0, %v9250_v32, 0  ;;  %v9136_v32 = vld [vmem:[%s10220_s5] sm:$0xf] }
 0x213   : > { %2999 = vmatmul.mubr.f32.vlgmr.msra.gmra.mrb[0].mxu0 %v2836_v58  ;;  %v3347_v52 = vand.u32 4294901760, %v3346_v49  ;;  %v9606_v58 = vmov 0   ;;  %v4319_v16 = vand.u32 4294901760, %v4246_v33 }
 0x214   : > { %3008 = vmatpush1.msra.mxu0 %v2770_v15  ;;  %3071 = vmatprep.mubr.f32.mxu0 %v9597_v1 }
 0x215   : > { %3084 = vmatprep.subr.mxu0 %v2848_v17  ;;  %9527 = vset.pattern.permute.xlu0 %v9606_v58  ;;  %v4320_v39 = vsub.f32 %v4246_v33, %v4319_v16 }
 0x21b   : > { %3075 = vmatmul.mubr.f32.vlgmr.msra.gmra.mrb[0].mxu0 %v2837_v59  ;;  %v3744_v59 = vpop.permute.xlu1 %3743 }
 0x21c   : > { %3088 = vmatpush1.msra.mxu0 %v2854_v21  ;;  %3151 = vmatprep.mubr.f32.mxu0 %v9597_v1  ;;  %v3747_v61 = vsel %vm3745_vm9, %v3742_v60, %v3744_v59 }
 0x21d   : > { %3160 = vmatprep.subr.mxu0 %v2768_v6  ;;  %v3753_v62 = vsel %vm297_vm3, %v3747_v61, 0  ;;  %v9249_v6 = vld [vmem:[%s10217_s2 + $0x1c] sm:$0xf] }
 0x21e   : > { %v3755_v3 = vand.u32 4294901760, %v3753_v62  ;;  %v3749_v10 = vsel %vm293_vm0, %v9249_v6, 0 }
 0x21f   : > { %v3822_v14 = vand.u32 4294901760, %v3749_v10 }
 0x220   : > { %v3834_v12 = vsub.f32 %v3753_v62, %v3755_v3 }
 0x221   : > { %v3823_v18 = vsub.f32 %v3749_v10, %v3822_v14 }
 0x222   : > { %v3835_v17 = vand.u32 4294901760, %v3834_v12 }
 0x223   : > { %3153 = vmatmul.mubr.f32.vlgmr.msra.gmra.mrb[0].mxu0 %v9909_v57  ;;  %v3824_v21 = vand.u32 4294901760, %v3823_v18 }
 0x224   : > { %3162 = vmatpush1.msra.mxu0 %v2770_v15  ;;  %3225 = vmatprep.mubr.f32.mxu0 %v9597_v1  ;;  %v3757_v15 = vand.u32 4294901760, %v3751_v11  ;;  %v3836_v20 = vsub.f32 %v3834_v12, %v3835_v17 }
 0x225   : > { %3266 = vmatprep.subr.mxu0 %v3265_v37  ;;  %v3825_v26 = vsub.f32 %v3823_v18, %v3824_v21 }
 0x226   : > { %v3840_v19 = vsub.f32 %v3751_v11, %v3757_v15  ;;  %v3837_v25 = vand.u32 4294901760, %v3836_v20 }
 0x227   : > { %v3826_v9 = vand.u32 4294901760, %v3825_v26  ;;  %v7666_v26 = vld [vmem:[#allocation3 + $0xc] sm:$0xf] }
 0x228   : > { %v3841_v24 = vand.u32 4294901760, %v3840_v19 }
 0x22a   : > { %v3842_v29 = vsub.f32 %v3840_v19, %v3841_v24 }
 0x22b   : > { %3227 = vmatmul.mubr.f32.vlgmr.msra.gmra.mrb[0].mxu0 %v9909_v57  ;;  %v4719_v57 = vld [vmem:[%s10218_s3] sm:$0xf] }
 0x22c   : > { %3268 = vmatpush1.msra.mxu0 %v3267_v45  ;;  %3331 = vmatprep.mubr.f32.mxu0 %v9597_v1  ;;  %v3843_v31 = vand.u32 4294901760, %v3842_v29 }
 0x22d   : > { %3348 = vmatprep.subr.mxu0 %v3347_v52  ;;  %4722 = vperm.xlu0 %9527, %v4719_v57  }
 0x233   : > { %3337 = vmatmul.mubr.f32.vlgmr.msra.gmra.mrb[0].mxu0 %v3336_v54 }
 0x234   : > { %3354 = vmatpush1.msra.mxu0 %v3353_v56  ;;  %3417 = vmatprep.mubr.f32.mxu0 %v9597_v1 }
 0x235   : > { %3427 = vmatprep.subr.mxu0 %v3344_v40 }
 0x23b   : > { %3419 = vmatmul.mubr.f32.vlgmr.msra.gmra.mrb[0].mxu0 %v9941_v44 }
 0x23c   : > { %3430 = vmatpush1.msra.mxu0 %v3350_v48  ;;  %3493 = vmatprep.mubr.f32.mxu0 %v9597_v1 }
 0x23d   : > { %3503 = vmatprep.subr.mxu0 %v3265_v37 }
 0x243   : > { %3496 = vmatmul.mubr.f32.vlgmr.msra.gmra.mrb[0].mxu0 %v3333_v47  ;;  %v4321_v47 = vand.u32 4294901760, %v4320_v39 }
 0x244   : > { %3505 = vmatpush1.msra.mxu0 %v3267_v45  ;;  %3568 = vmatprep.mubr.f32.mxu0 %v9597_v1 }
 0x245   : > { %3581 = vmatprep.subr.mxu0 %v3345_v46  ;;  %v4322_v52 = vsub.f32 %v4320_v39, %v4321_v47 }
 0x247   : > { %v4323_v55 = vand.u32 4294901760, %v4322_v52 }
 0x24b   : > { %3572 = vmatmul.mubr.f32.vlgmr.msra.gmra.mrb[0].mxu0 %v3334_v50 }
 0x24c   : > { %3585 = vmatpush1.msra.mxu0 %v3351_v51  ;;  %3648 = vmatprep.mubr.f32.mxu0 %v9597_v1 }
 0x24d   : > { %3657 = vmatprep.subr.mxu0 %v3265_v37 }
 0x253   : > { %3650 = vmatmul.mubr.f32.vlgmr.msra.gmra.mrb[0].mxu0 %v9941_v44 }
 0x254   : > { %3659 = vmatpush1.msra.mxu0 %v3267_v45  ;;  %3722 = vmatprep.mubr.f32.mxu0 %v9597_v1 }
 0x255   : > { %3756 = vmatprep.subr.mxu0 %v3755_v3 }
 0x25b   : > { %3724 = vmatmul.mubr.f32.vlgmr.msra.gmra.mrb[0].mxu0 %v9941_v44 }
 0x25c   : > { %3758 = vmatpush1.msra.mxu0 %v3757_v15  ;;  %3821 = vmatprep.mubr.f32.mxu0 %v9597_v1 }
 0x25d   : > { %3838 = vmatprep.subr.mxu0 %v3837_v25 }
 0x263   : > { %3827 = vmatmul.mubr.f32.vlgmr.msra.gmra.mrb[0].mxu0 %v3826_v9 }
 0x264   : > { %3844 = vmatpush1.msra.mxu0 %v3843_v31  ;;  %3907 = vmatprep.mubr.f32.mxu0 %v9597_v1  ;;  %v8646_v31 = vld [vmem:[#allocation3 + $0xc] sm:$0xf] }
 0x265   : > { %3917 = vmatprep.subr.mxu0 %v3834_v12 }
 0x26b   : > { %3909 = vmatmul.mubr.f32.vlgmr.msra.gmra.mrb[0].mxu0 %v3822_v14 }
 0x26c   : > { %3920 = vmatpush1.msra.mxu0 %v3840_v19  ;;  %3983 = vmatprep.mubr.f32.mxu0 %v9597_v1 }
 0x26d   : > { %3993 = vmatprep.subr.mxu0 %v3755_v3 }
 0x273   : > { %3986 = vmatmul.mubr.f32.vlgmr.msra.gmra.mrb[0].mxu0 %v3823_v18 }
 0x274   : > { %3995 = vmatpush1.msra.mxu0 %v3757_v15  ;;  %4058 = vmatprep.mubr.f32.mxu0 %v9597_v1 }
 0x275   : > { %4071 = vmatprep.subr.mxu0 %v3835_v17 }
 0x27b   : > { %4062 = vmatmul.mubr.f32.vlgmr.msra.gmra.mrb[0].mxu0 %v3824_v21 }
 0x27c   : > { %4075 = vmatpush1.msra.mxu0 %v3841_v24  ;;  %4138 = vmatprep.mubr.f32.mxu0 %v9597_v1  ;;  %v4242_v34 = vpop.permute.xlu0 %4241 }
 0x27d   : > { %4147 = vmatprep.subr.mxu0 %v3755_v3 }
 0x27f   : > { %v4240_v8 = vpop.permute.xlu1 %4239 }
 0x280   : > { %v4244_v35 = vsel %vm272_vm1, %v4240_v8, %v4242_v34 }
 0x281   : > { %v4250_v36 = vsel %vm297_vm3, %v4244_v35, 0 }
 0x282   : > { %v4252_v37 = vand.u32 4294901760, %v4250_v36 }
 0x283   : > { %4140 = vmatmul.mubr.f32.vlgmr.msra.gmra.mrb[0].mxu0 %v3822_v14  ;;  %v4238_v38 = vpop.permute.xlu1 %4237 }
 0x284   : > { %v4331_v40 = vsub.f32 %v4250_v36, %v4252_v37  ;;  %4149 = vmatpush1.msra.mxu0 %v3757_v15  ;;  %v4243_v42 = vsel %vm272_vm1, %v4238_v38, %v4240_v8  ;;  %4212 = vmatprep.mubr.f32.mxu0 %v9597_v1 }
 0x285   : > { %v4248_v44 = vsel %vm297_vm3, %v4243_v42, 0  ;;  %4253 = vmatprep.subr.mxu0 %v4252_v37 }
 0x286   : > { %v4254_v45 = vand.u32 4294901760, %v4248_v44  ;;  %v4332_v46 = vand.u32 4294901760, %v4331_v40 }
 0x288   : > { %v4337_v48 = vsub.f32 %v4248_v44, %v4254_v45  ;;  %v4333_v49 = vsub.f32 %v4331_v40, %v4332_v46 }
 0x28a   : > { %v4338_v50 = vand.u32 4294901760, %v4337_v48  ;;  %v4334_v51 = vand.u32 4294901760, %v4333_v49 }
 0x28b   : > { %4214 = vmatmul.mubr.f32.vlgmr.msra.gmra.mrb[0].mxu0 %v3822_v14 }
 0x28c   : > { %4255 = vmatpush1.msra.mxu0 %v4254_v45  ;;  %4318 = vmatprep.mubr.f32.mxu0 %v9597_v1  ;;  %v4339_v53 = vsub.f32 %v4337_v48, %v4338_v50 }
 0x28d   : > { %4335 = vmatprep.subr.mxu0 %v4334_v51 }
 0x28e   : > { %v4340_v54 = vand.u32 4294901760, %v4339_v53 }
 0x293   : > { %4324 = vmatmul.mubr.f32.vlgmr.msra.gmra.mrb[0].mxu0 %v4323_v55 }
 0x294   : > { %4341 = vmatpush1.msra.mxu0 %v4340_v54  ;;  %4404 = vmatprep.mubr.f32.mxu0 %v9597_v1 }
 0x295   : > { %4414 = vmatprep.subr.mxu0 %v4331_v40 }
 0x29b   : > { %4406 = vmatmul.mubr.f32.vlgmr.msra.gmra.mrb[0].mxu0 %v4319_v16 }
 0x29c   : > { %4417 = vmatpush1.msra.mxu0 %v4337_v48  ;;  %4480 = vmatprep.mubr.f32.mxu0 %v9597_v1 }
 0x29d   : > { %4490 = vmatprep.subr.mxu0 %v4252_v37 }
 0x2a3   : > { %4483 = vmatmul.mubr.f32.vlgmr.msra.gmra.mrb[0].mxu0 %v4320_v39 }
 0x2a4   : > { %4492 = vmatpush1.msra.mxu0 %v4254_v45  ;;  %4555 = vmatprep.mubr.f32.mxu0 %v9597_v1 }
 0x2a5   : > { %4568 = vmatprep.subr.mxu0 %v4332_v46 }
 0x2ab   : > { %4559 = vmatmul.mubr.f32.vlgmr.msra.gmra.mrb[0].mxu0 %v4321_v47 }
 0x2ac   : > { %4572 = vmatpush1.msra.mxu0 %v4338_v50  ;;  %4635 = vmatprep.mubr.f32.mxu0 %v9597_v1  ;;  %v4723_v56 = vpop.permute.xlu0 %4722 }
 0x2ad   : > { %4644 = vmatprep.subr.mxu0 %v4252_v37 }
 0x2b3   : > { %4637 = vmatmul.mubr.f32.vlgmr.msra.gmra.mrb[0].mxu0 %v4319_v16 }
 0x2b4   : > { %4646 = vmatpush1.msra.mxu0 %v4254_v45  ;;  %4709 = vmatprep.mubr.f32.mxu0 %v9597_v1 }
 0x2bb   : > { %4711 = vmatmul.mubr.f32.vlgmr.msra.gmra.mrb[0].mxu0 %v4319_v16 }
 0x38e   : > { %v4712_v57 = vpop.f32.mrb[0].mxu0 }
 0x38f   : > { %v4725_v58 = vadd.f32 %v4723_v56, %v4712_v57  ;;  %v4714_v59 = vpop.f32.mrb[1].mxu0 }
 0x390   : > { %v4726_v60 = vadd.f32 %v4723_v56, %v4714_v59 }
 0x391   : > { %vm4727_vm10 = vcmp.ge.f32.partialorder %v4725_v58, 0.0  ;;  %v4729_v61 = vmul.f32 0.2, %v4725_v58 }
 0x392   : > { %vm4728_vm11 = vcmp.ge.f32.partialorder %v4726_v60, 0.0  ;;  %v4730_v62 = vmul.f32 0.2, %v4726_v60 }
 0x393   : > { %v4731_v0 = vsel %vm4727_vm10, %v4725_v58, %v4729_v61  ;;  %v4744_v61 = vld [vmem:[%s10219_s4] sm:$0xf] }
 0x394   : > { %v4732_v3 = vsel %vm4728_vm11, %v4726_v60, %v4730_v62 }
 0x395   : > { %v9987_v6 = vcombine.low %v4731_v0, %v4732_v3  ;;  %v10018_v29 = vcombine.low %v4732_v3, %v4732_v3  ;;  %v5242_v3 = vsel %vm293_vm0, %v4744_v61, 0 }
 0x397   : > { %4739 = vst [vmem:[#allocation3 + $0x4] sm:$0xff] %v9987_v6 }
 0x39e   : > { %v4740_v7 = vld [vmem:[#allocation3] sm:$0xff]  ;;  %v4741_v10 = vld [vmem:[#allocation3 + $0x8] sm:$0xf] }
 0x39f   : > { %4750 = vrot.lane.b32.xlu0 %v4740_v7, %s9599_s19  ;;  %v4749_v11 = vcombine.high %v4740_v7, %v4740_v7  ;;  %v4743_v12 = vmul.f32 %v4741_v10, %v9739_v22  ;;  %v5715_v14 = vmul.f32 %v4740_v7, %v9763_v43  ;;  %v4742_v15 = vmul.f32 %v4740_v7, %v9743_v23  ;;  %v6205_v19 = vld [vmem:[#allocation3 + $0x8] sm:$0xf] }
 0x3a0   : > { %v5714_v20 = vld [vmem:[#allocation3 + $0x8] sm:$0xf]  ;;  %v6207_v22 = vmul.f32 %v6205_v19, %v9790_v2  ;;  %v7176_v23 = vmul.f32 %v9987_v6, %v9850_v4  ;;  %v6206_v21 = vmul.f32 %v4740_v7, %v9794_v5  ;;  %v7175_v2 = vld [vmem:[#allocation3 + $0xc] sm:$0xf]  ;;  %v7668_v4 = vmul.f32 %v7666_v26, %v9859_v13 }
 0x3a1   : > { %4752 = vrot.lane.b32.xlu1 %v4749_v11, %s9599_s19  ;;  %v5721_v17 = vcombine.high %v5715_v14, %v5715_v14  ;;  %v5232_v18 = vcombine.high %v4742_v15, %v4742_v15  ;;  %v5716_v43 = vmul.f32 %v5714_v20, %v9759_v41  ;;  %v7177_v41 = vmul.f32 %v7175_v2, %v9843_v63  ;;  %v8157_v13 = vld [vmem:[#allocation3 + $0xc] sm:$0xf] }
 0x3a2   : > { %v7182_v24 = vcombine.high %v7176_v23, %v7176_v23  ;;  %v6212_v25 = vcombine.high %v6206_v21, %v6206_v21  ;;  %v7667_v5 = vmul.f32 %v9987_v6, %v9863_v27  ;;  %v8648_v63 = vmul.f32 %v8646_v31, %v9917_v28  ;;  %v9251_v28 = vld [vmem:[%s10219_s4 + $0x4] sm:$0xf] }
 0x3a3   : > { %5237 = vrot.lane.b32.xlu0 %v4743_v12, %s9601_s29  ;;  %v8647_v27 = vmul.f32 %v9987_v6, %v9921_v30  ;;  %v4759_v34 = vsel %vm293_vm0, %v9251_v28, 0  ;;  %v5315_v11 = vand.u32 4294901760, %v5242_v3 }
 0x3a4   : > { %v7673_v9 = vcombine.high %v7667_v5, %v7667_v5  ;;  %v10040_v8 = vand.u32 4294901760, %v4759_v34 }
 0x3a5   : > { %4754 = vrot.lane.b32.xlu1 %v4741_v10, %s9599_s19  ;;  %v8653_v33 = vcombine.high %v8647_v27, %v8647_v27 }
 0x3a6   : > { %v4833_v30 = vsub.f32 %v4759_v34, %v10040_v8 }
 0x3a7   : > { %5724 = vrot.lane.b32.xlu0 %v5721_v17, %s9603_s10 }
 0x3a8   : > { %v4834_v16 = vand.u32 4294901760, %v4833_v30 }
 0x3a9   : > { %5235 = vrot.lane.b32.xlu1 %v5232_v18, %s9601_s29 }
 0x3aa   : > { %v4835_v40 = vsub.f32 %v4833_v30, %v4834_v16 }
 0x3ab   : > { %5722 = vrot.lane.b32.xlu0 %v5715_v14, %s9603_s10 }
 0x3ac   : > { %v4836_v48 = vand.u32 4294901760, %v4835_v40 }
 0x3ad   : > { %5233 = vrot.lane.b32.xlu1 %v4742_v15, %s9601_s29  ;;  %v5316_v15 = vsub.f32 %v5242_v3, %v5315_v11  ;;  %s9537_s29 = sshll.u32 %s9607_s25, 4  ;;  %s9538_s29 = int_to_ptr.vmem [resolvable:$false] %s9537_s29 }
 0x3af   : > { %6217 = vrot.lane.b32.xlu0 %v6207_v22, %s9604_s13  ;;  %v5317_v19 = vand.u32 4294901760, %v5316_v15 }
 0x3b1   : > { %5726 = vrot.lane.b32.xlu1 %v5716_v43, %s9603_s10 }
 0x3b3   : > { %7185 = vrot.lane.b32.xlu0 %v7182_v24, %s9602_s9 }
 0x3b5   : > { %6215 = vrot.lane.b32.xlu1 %v6212_v25, %s9604_s13 }
 0x3b7   : > { %7183 = vrot.lane.b32.xlu0 %v7176_v23, %s9602_s9  ;;  %v5318_v23 = vsub.f32 %v5316_v15, %v5317_v19 }
 0x3b9   : > { %6213 = vrot.lane.b32.xlu1 %v6206_v21, %s9604_s13  ;;  %v5319_v21 = vand.u32 4294901760, %v5318_v23  ;;  %s242_s13 = sand.u32 1, %s9587_s22  }
 0x3ba   : > { %s9162_s26 = scalar_lea.sflag [#allocation5], %s242_s13 }
 0x3bb   : > { %7678 = vrot.lane.b32.xlu0 %v7668_v4, %s9600_s20 }
 0x3bd   : > { %7187 = vrot.lane.b32.xlu1 %v7177_v41, %s9602_s9 }
 0x3bf   : > { %8165 = vrot.lane.b32.xlu0 %v10018_v29, %s9605_s28 }
 0x3c1   : > { %7676 = vrot.lane.b32.xlu1 %v7673_v9, %s9600_s20 }
 0x3c3   : > { %8163 = vrot.lane.b32.xlu0 %v9987_v6, %s9605_s28 }
 0x3c5   : > { %7674 = vrot.lane.b32.xlu1 %v7667_v5, %s9600_s20  ;;  %v9252_v5 = vld [vmem:[%s10219_s4 + $0x8] sm:$0xf]  ;;  %s9539_s20 = scalar_lea.vmem %s9538_s29, 256 }
 0x3c7   : > { %8658 = vrot.lane.b32.xlu0 %v8648_v63, %s9598_s16  ;;  %v5731_v63 = vsel %vm293_vm0, %v9252_v5, 0 }
 0x3c9   : > { %8167 = vrot.lane.b32.xlu1 %v8157_v13, %s9605_s28  ;;  %s9239_s28 = sshll.u32 %s242_s13, 3 }
 0x3ca   : > { %s244_s12 = scalar_lea.vmem [#allocation4], %s9239_s28 }
 0x3cb   : > { %9139 = vperm.xlu0 %9527, %v9136_v32   ;;  %v5804_v32 = vand.u32 4294901760, %v5731_v63  ;;  %s9176_s14 = sshll.u32 %s244_s12, 4  ;;  %s10175_s14 = int_to_ptr.vmem [resolvable:$true] %s9176_s14 }
 0x3cc   : > { %s9533_s19 = scalar_lea.vmem %s10175_s14, 128  ;;  %p9540_p0 = scmp.lt.s32.totalorder %s10175_s14, %s9538_s29 }
 0x3cd   : > { %8656 = vrot.lane.b32.xlu1 %v8653_v33, %s9598_s16  ;;  %v5805_v34 = vsub.f32 %v5731_v63, %v5804_v32  ;;  %p9534_p11 = scmp.ne.s32.totalorder %s10175_s14, %s9533_s19  ;;  %p9541_p1 = scmp.lt.s32.totalorder %s9539_s20, %s9533_s19 }
 0x3cf   : > { %p9535_p12 = pnand %p9534_p11, %p9681_p5  ;;  %p9542_p2 = por %p9541_p1, %p9540_p0 }
 0x3d1   : > { %8654 = vrot.lane.b32.xlu1 %v8647_v27, %s9598_s16  ;;  %p9536_p13 = pneg %p9535_p12 }
 0x3d3   : > { %p9543_p3 = pnand %p9542_p2, %p9536_p13 }
 0x411   : > { %v4751_v35 = vpop.permute.xlu0 %4750 }
 0x413   : > { %v4753_v36 = vpop.permute.xlu1 %4752 }
 0x414   : > { %v4756_v37 = vsel %vm290_vm2, %v4751_v35, %v4753_v36 }
 0x415   : > { %v4761_v38 = vsel %vm297_vm3, %v4756_v37, 0  ;;  %v5238_v57 = vpop.permute.xlu0 %5237 }
 0x416   : > { %v4767_v39 = vand.u32 4294901760, %v4761_v38 }
 0x417   : > { %v4755_v42 = vpop.permute.xlu1 %4754 }
 0x418   : > { %v4850_v44 = vsub.f32 %v4761_v38, %v4767_v39  ;;  %v4757_v45 = vsel %vm290_vm2, %v4753_v36, %v4755_v42 }
 0x419   : > { %v4763_v46 = vsel %vm297_vm3, %v4757_v45, 0  ;;  %v5725_v26 = vpop.permute.xlu0 %5724 }
 0x41a   : > { %v4765_v47 = vand.u32 4294901760, %v4763_v46  ;;  %v4851_v49 = vand.u32 4294901760, %v4850_v44 }
 0x41b   : > { %v5236_v56 = vpop.permute.xlu1 %5235 }
 0x41c   : > { %v4844_v50 = vsub.f32 %v4763_v46, %v4765_v47  ;;  %4766 = vmatprep.subr.mxu1 %v4765_v47  ;;  %v4852_v52 = vsub.f32 %v4850_v44, %v4851_v49  ;;  %v5240_v58 = vsel %vm776_vm5, %v5236_v56, %v5238_v57 }
 0x41d   : > { %4768 = vmatpush1.msra.mxu1 %v4767_v39  ;;  %v5246_v59 = vsel %vm297_vm3, %v5240_v58, 0  ;;  %v5723_v41 = vpop.permute.xlu0 %5722 }
 0x41e   : > { %4837 = vmatmul.mubr.f32.vlgmr.msra.gmra.mrb[0].mxu1 %v4836_v48  ;;  %v4845_v51 = vand.u32 4294901760, %v4844_v50  ;;  %v4853_v54 = vand.u32 4294901760, %v4852_v52  ;;  %v5248_v62 = vand.u32 4294901760, %v5246_v59  ;;  %v5728_v31 = vsel %vm1283_vm7, %v5723_v41, %v5725_v26  ;;  %v9253_v48 = vld [vmem:[%s10219_s4 + $0xc] sm:$0xf] }
 0x41f   : > { %4917 = vmatprep.mubr.f32.mxu1 %v9597_v1  ;;  %v5234_v60 = vpop.permute.xlu1 %5233  ;;  %v5733_v13 = vsel %vm297_vm3, %v5728_v31, 0 }
 0x420   : > { %v4846_v53 = vsub.f32 %v4844_v50, %v4845_v51  ;;  %v5239_v0 = vsel %vm776_vm5, %v5234_v60, %v5236_v56  ;;  %v5327_v7 = vsub.f32 %v5246_v59, %v5248_v62  ;;  %v5739_v33 = vand.u32 4294901760, %v5733_v13 }
 0x421   : > { %v5244_v10 = vsel %vm297_vm3, %v5239_v0, 0 }
 0x422   : > { %v4847_v55 = vand.u32 4294901760, %v4846_v53  ;;  %v5250_v12 = vand.u32 4294901760, %v5244_v10  ;;  %v5328_v14 = vand.u32 4294901760, %v5327_v7 }
 0x423   : > { %v5727_v25 = vpop.permute.xlu1 %5726 }
 0x424   : > { %4848 = vmatprep.subr.mxu1 %v4847_v55  ;;  %v5333_v17 = vsub.f32 %v5244_v10, %v5250_v12  ;;  %v5329_v18 = vsub.f32 %v5327_v7, %v5328_v14  ;;  %v5729_v2 = vsel %vm1283_vm7, %v5725_v26, %v5727_v25 }
 0x425   : > { %4854 = vmatpush1.msra.mxu1 %v4853_v54  ;;  %v5735_v4 = vsel %vm297_vm3, %v5729_v2, 0 }
 0x426   : > { %4919 = vmatmul.mubr.f32.vlgmr.msra.gmra.mrb[0].mxu1 %v10040_v8  ;;  %4927 = vmatprep.subr.mxu1 %v4844_v50  ;;  %v5334_v20 = vand.u32 4294901760, %v5333_v17  ;;  %v5330_v22 = vand.u32 4294901760, %v5329_v18  ;;  %v5737_v9 = vand.u32 4294901760, %v5735_v4 }
 0x427   : > { %4930 = vmatpush1.msra.mxu1 %v4850_v44  ;;  %4993 = vmatprep.mubr.f32.mxu1 %v9597_v1  ;;  %v6216_v42 = vpop.permute.xlu1 %6215  ;;  %v6218_v44 = vpop.permute.xlu0 %6217 }
 0x428   : > { %5003 = vmatprep.subr.mxu1 %v4765_v47  ;;  %v5335_v43 = vsub.f32 %v5333_v17, %v5334_v20  ;;  %v5816_v27 = vsub.f32 %v5735_v4, %v5737_v9  ;;  %v6220_v45 = vsel %vm1782_vm8, %v6216_v42, %v6218_v44 }
 0x429   : > { %v6226_v46 = vsel %vm297_vm3, %v6220_v45, 0 }
 0x42a   : > { %v5336_v24 = vand.u32 4294901760, %v5335_v43  ;;  %v5817_v28 = vand.u32 4294901760, %v5816_v27 }
 0x42b   : > { %v7186_v5 = vpop.permute.xlu0 %7185 }
 0x42e   : > { %4996 = vmatmul.mubr.f32.vlgmr.msra.gmra.mrb[0].mxu1 %v4833_v30  ;;  %v5818_v30 = vsub.f32 %v5816_v27, %v5817_v28 }
 0x42f   : > { %5005 = vmatpush1.msra.mxu1 %v4767_v39  ;;  %5068 = vmatprep.mubr.f32.mxu1 %v9597_v1  ;;  %v7184_v63 = vpop.permute.xlu0 %7183 }
 0x430   : > { %5081 = vmatprep.subr.mxu1 %v4845_v51  ;;  %v5819_v36 = vand.u32 4294901760, %v5818_v30  ;;  %v6222_v51 = vsel %vm293_vm0, %v9253_v48, 0 }
 0x431   : > { %v6295_v55 = vand.u32 4294901760, %v6222_v51 }
 0x433   : > { %v6296_v57 = vsub.f32 %v6222_v51, %v6295_v55  ;;  %v7679_v48 = vpop.permute.xlu0 %7678 }
 0x435   : > { %v6297_v60 = vand.u32 4294901760, %v6296_v57 }
 0x436   : > { %5072 = vmatmul.mubr.f32.vlgmr.msra.gmra.mrb[0].mxu1 %v4834_v16  ;;  %v5806_v16 = vand.u32 4294901760, %v5805_v34 }
 0x437   : > { %5085 = vmatpush1.msra.mxu1 %v4851_v49  ;;  %5148 = vmatprep.mubr.f32.mxu1 %v9597_v1  ;;  %v6228_v49 = vand.u32 4294901760, %v6226_v46  ;;  %v6298_v0 = vsub.f32 %v6296_v57, %v6297_v60 }
 0x438   : > { %5157 = vmatprep.subr.mxu1 %v4765_v47  ;;  %v5807_v37 = vsub.f32 %v5805_v34, %v5806_v16  ;;  %v6214_v47 = vpop.permute.xlu1 %6213 }
 0x439   : > { %v6219_v50 = vsel %vm1782_vm8, %v6214_v47, %v6216_v42  ;;  %v6307_v52 = vsub.f32 %v6226_v46, %v6228_v49 }
 0x43a   : > { %v6224_v53 = vsel %vm297_vm3, %v6219_v50, 0 }
 0x43b   : > { %v6230_v54 = vand.u32 4294901760, %v6224_v53  ;;  %v6308_v56 = vand.u32 4294901760, %v6307_v52 }
 0x43c   : > { %v7188_v41 = vpop.permute.xlu1 %7187 }
 0x43d   : > { %v6313_v58 = vsub.f32 %v6224_v53, %v6230_v54  ;;  %v6309_v59 = vsub.f32 %v6307_v52, %v6308_v56 }
 0x43e   : > { %5150 = vmatmul.mubr.f32.vlgmr.msra.gmra.mrb[0].mxu1 %v10040_v8 }
 0x43f   : > { %5159 = vmatpush1.msra.mxu1 %v4767_v39  ;;  %5222 = vmatprep.mubr.f32.mxu1 %v9597_v1  ;;  %v5808_v39 = vand.u32 4294901760, %v5807_v37  ;;  %v6314_v61 = vand.u32 4294901760, %v6313_v58 }
 0x440   : > { %5249 = vmatprep.subr.mxu1 %v5248_v62  ;;  %v7677_v47 = vpop.permute.xlu1 %7676 }
 0x441   : > { %v6315_v3 = vsub.f32 %v6313_v58, %v6314_v61 }
 0x443   : > { %v6316_v10 = vand.u32 4294901760, %v6315_v3 }
 0x444   : > { %v7675_v51 = vpop.permute.xlu1 %7674 }
 0x446   : > { %5224 = vmatmul.mubr.f32.vlgmr.msra.gmra.mrb[0].mxu1 %v10040_v8  ;;  %v5822_v8 = vsub.f32 %v5733_v13, %v5739_v33  ;;  %v9255_v13 = vld [vmem:[%s10219_s4 + $0x14] sm:$0xf] }
 0x447   : > { %5251 = vmatpush1.msra.mxu1 %v5250_v12  ;;  %5314 = vmatprep.mubr.f32.mxu1 %v9597_v1 }
 0x448   : > { %5331 = vmatprep.subr.mxu1 %v5330_v22  ;;  %v5823_v35 = vand.u32 4294901760, %v5822_v8 }
 0x44a   : > { %v5824_v38 = vsub.f32 %v5822_v8, %v5823_v35 }
 0x44c   : > { %v5825_v40 = vand.u32 4294901760, %v5824_v38 }
 0x44e   : > { %5320 = vmatmul.mubr.f32.vlgmr.msra.gmra.mrb[0].mxu1 %v5319_v21 }
 0x44f   : > { %5337 = vmatpush1.msra.mxu1 %v5336_v24  ;;  %5400 = vmatprep.mubr.f32.mxu1 %v9597_v1 }
 0x450   : > { %5410 = vmatprep.subr.mxu1 %v5327_v7  ;;  %v6299_v7 = vand.u32 4294901760, %v6298_v0 }
 0x456   : > { %5402 = vmatmul.mubr.f32.vlgmr.msra.gmra.mrb[0].mxu1 %v5315_v11 }
 0x457   : > { %5413 = vmatpush1.msra.mxu1 %v5333_v17  ;;  %5476 = vmatprep.mubr.f32.mxu1 %v9597_v1  ;;  %v6703_v17 = vsel %vm297_vm3, %v9987_v6, 0 }
 0x458   : > { %5486 = vmatprep.subr.mxu1 %v5248_v62 }
 0x45e   : > { %5479 = vmatmul.mubr.f32.vlgmr.msra.gmra.mrb[0].mxu1 %v5316_v15 }
 0x45f   : > { %5488 = vmatpush1.msra.mxu1 %v5250_v12  ;;  %5551 = vmatprep.mubr.f32.mxu1 %v9597_v1 }
 0x460   : > { %5564 = vmatprep.subr.mxu1 %v5328_v14 }
 0x466   : > { %5555 = vmatmul.mubr.f32.vlgmr.msra.gmra.mrb[0].mxu1 %v5317_v19 }
 0x467   : > { %5568 = vmatpush1.msra.mxu1 %v5334_v20  ;;  %5631 = vmatprep.mubr.f32.mxu1 %v9597_v1  ;;  %v6709_v20 = vand.u32 4294901760, %v6703_v17 }
 0x468   : > { %5640 = vmatprep.subr.mxu1 %v5248_v62  ;;  %v6310_v62 = vand.u32 4294901760, %v6309_v59 }
 0x469   : > { %v6792_v23 = vsub.f32 %v6703_v17, %v6709_v20  ;;  %v8168_v17 = vpop.permute.xlu1 %8167 }
 0x46b   : > { %v6793_v24 = vand.u32 4294901760, %v6792_v23 }
 0x46d   : > { %v6794_v6 = vsub.f32 %v6792_v23, %v6793_v24 }
 0x46e   : > { %5633 = vmatmul.mubr.f32.vlgmr.msra.gmra.mrb[0].mxu1 %v5315_v11 }
 0x46f   : > { %5642 = vmatpush1.msra.mxu1 %v5250_v12  ;;  %5705 = vmatprep.mubr.f32.mxu1 %v9597_v1  ;;  %v9254_v12 = vld [vmem:[%s10219_s4 + $0x10] sm:$0xf]  ;;  %v6795_v4 = vand.u32 4294901760, %v6794_v6 }
 0x470   : > { %5738 = vmatprep.subr.mxu1 %v5737_v9  ;;  %v6701_v15 = vsel %vm293_vm0, %v9254_v12, 0 }
 0x471   : > { %v6774_v19 = vand.u32 4294901760, %v6701_v15 }
 0x473   : > { %v6775_v22 = vsub.f32 %v6701_v15, %v6774_v19 }
 0x475   : > { %v6776_v21 = vand.u32 4294901760, %v6775_v22 }
 0x476   : > { %5707 = vmatmul.mubr.f32.vlgmr.msra.gmra.mrb[0].mxu1 %v5315_v11  ;;  %v6705_v11 = vsel %vm297_vm3, %v10018_v29, 0 }
 0x477   : > { %5740 = vmatpush1.msra.mxu1 %v5739_v33  ;;  %5803 = vmatprep.mubr.f32.mxu1 %v9597_v1  ;;  %v6707_v14 = vand.u32 4294901760, %v6705_v11  ;;  %v6777_v26 = vsub.f32 %v6775_v22, %v6776_v21 }
 0x478   : > { %5820 = vmatprep.subr.mxu1 %v5819_v36 }
 0x479   : > { %v6786_v18 = vsub.f32 %v6705_v11, %v6707_v14  ;;  %v6778_v2 = vand.u32 4294901760, %v6777_v26 }
 0x47b   : > { %v6787_v29 = vand.u32 4294901760, %v6786_v18 }
 0x47d   : > { %v6788_v43 = vsub.f32 %v6786_v18, %v6787_v29 }
 0x47e   : > { %5809 = vmatmul.mubr.f32.vlgmr.msra.gmra.mrb[0].mxu1 %v5808_v39 }
 0x47f   : > { %5826 = vmatpush1.msra.mxu1 %v5825_v40  ;;  %5889 = vmatprep.mubr.f32.mxu1 %v9597_v1  ;;  %v6789_v25 = vand.u32 4294901760, %v6788_v43 }
 0x480   : > { %5899 = vmatprep.subr.mxu1 %v5816_v27 }
 0x486   : > { %5891 = vmatmul.mubr.f32.vlgmr.msra.gmra.mrb[0].mxu1 %v5804_v32 }
 0x487   : > { %5902 = vmatpush1.msra.mxu1 %v5822_v8  ;;  %5965 = vmatprep.mubr.f32.mxu1 %v9597_v1 }
 0x488   : > { %5975 = vmatprep.subr.mxu1 %v5737_v9 }
 0x48e   : > { %5968 = vmatmul.mubr.f32.vlgmr.msra.gmra.mrb[0].mxu1 %v5805_v34 }
 0x48f   : > { %5977 = vmatpush1.msra.mxu1 %v5739_v33  ;;  %6040 = vmatprep.mubr.f32.mxu1 %v9597_v1 }
 0x490   : > { %6053 = vmatprep.subr.mxu1 %v5817_v28 }
 0x496   : > { %6044 = vmatmul.mubr.f32.vlgmr.msra.gmra.mrb[0].mxu1 %v5806_v16 }
 0x497   : > { %6057 = vmatpush1.msra.mxu1 %v5823_v35  ;;  %6120 = vmatprep.mubr.f32.mxu1 %v9597_v1 }
 0x498   : > { %6129 = vmatprep.subr.mxu1 %v5737_v9  ;;  %v7190_v9 = vsel %vm1765_vm6, %v7186_v5, %v7188_v41 }
 0x499   : > { %v7196_v31 = vsel %vm297_vm3, %v7190_v9, 0 }
 0x49a   : > { %v7198_v27 = vand.u32 4294901760, %v7196_v31 }
 0x49c   : > { %v7277_v34 = vsub.f32 %v7196_v31, %v7198_v27 }
 0x49e   : > { %6122 = vmatmul.mubr.f32.vlgmr.msra.gmra.mrb[0].mxu1 %v5804_v32  ;;  %v7278_v16 = vand.u32 4294901760, %v7277_v34 }
 0x49f   : > { %6131 = vmatpush1.msra.mxu1 %v5739_v33  ;;  %6194 = vmatprep.mubr.f32.mxu1 %v9597_v1  ;;  %v7192_v33 = vsel %vm293_vm0, %v9255_v13, 0 }
 0x4a0   : > { %6229 = vmatprep.subr.mxu1 %v6228_v49  ;;  %v7265_v8 = vand.u32 4294901760, %v7192_v33  ;;  %v7279_v37 = vsub.f32 %v7277_v34, %v7278_v16 }
 0x4a2   : > { %v7266_v35 = vsub.f32 %v7192_v33, %v7265_v8  ;;  %v7280_v40 = vand.u32 4294901760, %v7279_v37 }
 0x4a4   : > { %v7267_v38 = vand.u32 4294901760, %v7266_v35 }
 0x4a6   : > { %6196 = vmatmul.mubr.f32.vlgmr.msra.gmra.mrb[0].mxu1 %v5804_v32  ;;  %v7189_v32 = vsel %vm1765_vm6, %v7184_v63, %v7186_v5  ;;  %v7268_v42 = vsub.f32 %v7266_v35, %v7267_v38 }
 0x4a7   : > { %6231 = vmatpush1.msra.mxu1 %v6230_v54  ;;  %6294 = vmatprep.mubr.f32.mxu1 %v9597_v1  ;;  %v7194_v28 = vsel %vm297_vm3, %v7189_v32, 0 }
 0x4a8   : > { %6311 = vmatprep.subr.mxu1 %v6310_v62  ;;  %v7200_v30 = vand.u32 4294901760, %v7194_v28  ;;  %v7269_v45 = vand.u32 4294901760, %v7268_v42 }
 0x4aa   : > { %v7283_v36 = vsub.f32 %v7194_v28, %v7200_v30  ;;  %v8657_v28 = vpop.permute.xlu1 %8656 }
 0x4ac   : > { %v7284_v39 = vand.u32 4294901760, %v7283_v36 }
 0x4ae   : > { %6300 = vmatmul.mubr.f32.vlgmr.msra.gmra.mrb[0].mxu1 %v6299_v7  ;;  %v7285_v44 = vsub.f32 %v7283_v36, %v7284_v39 }
 0x4af   : > { %6317 = vmatpush1.msra.mxu1 %v6316_v10  ;;  %6380 = vmatprep.mubr.f32.mxu1 %v9597_v1 }
 0x4b0   : > { %6390 = vmatprep.subr.mxu1 %v6307_v52  ;;  %v7286_v46 = vand.u32 4294901760, %v7285_v44  ;;  %v9256_v52 = vld [vmem:[%s10219_s4 + $0x18] sm:$0xf] }
 0x4b6   : > { %6382 = vmatmul.mubr.f32.vlgmr.msra.gmra.mrb[0].mxu1 %v6295_v55 }
 0x4b7   : > { %6393 = vmatpush1.msra.mxu1 %v6313_v58  ;;  %6456 = vmatprep.mubr.f32.mxu1 %v9597_v1 }
 0x4b8   : > { %6466 = vmatprep.subr.mxu1 %v6228_v49 }
 0x4be   : > { %6459 = vmatmul.mubr.f32.vlgmr.msra.gmra.mrb[0].mxu1 %v6296_v57 }
 0x4bf   : > { %6468 = vmatpush1.msra.mxu1 %v6230_v54  ;;  %6531 = vmatprep.mubr.f32.mxu1 %v9597_v1 }
 0x4c0   : > { %6544 = vmatprep.subr.mxu1 %v6308_v56 }
 0x4c6   : > { %6535 = vmatmul.mubr.f32.vlgmr.msra.gmra.mrb[0].mxu1 %v6297_v60 }
 0x4c7   : > { %6548 = vmatpush1.msra.mxu1 %v6314_v61  ;;  %6611 = vmatprep.mubr.f32.mxu1 %v9597_v1 }
 0x4c8   : > { %6620 = vmatprep.subr.mxu1 %v6228_v49  ;;  %v7681_v49 = vsel %vm1266_vm4, %v7677_v47, %v7679_v48 }
 0x4c9   : > { %v7687_v50 = vsel %vm297_vm3, %v7681_v49, 0 }
 0x4ca   : > { %v7689_v53 = vand.u32 4294901760, %v7687_v50 }
 0x4cc   : > { %v7768_v56 = vsub.f32 %v7687_v50, %v7689_v53 }
 0x4ce   : > { %6613 = vmatmul.mubr.f32.vlgmr.msra.gmra.mrb[0].mxu1 %v6295_v55  ;;  %v7769_v60 = vand.u32 4294901760, %v7768_v56 }
 0x4cf   : > { %6622 = vmatpush1.msra.mxu1 %v6230_v54  ;;  %6685 = vmatprep.mubr.f32.mxu1 %v9597_v1  ;;  %v7683_v54 = vsel %vm293_vm0, %v9256_v52, 0 }
 0x4d0   : > { %6708 = vmatprep.subr.mxu1 %v6707_v14  ;;  %v7756_v58 = vand.u32 4294901760, %v7683_v54  ;;  %v7770_v0 = vsub.f32 %v7768_v56, %v7769_v60 }
 0x4d2   : > { %v7757_v61 = vsub.f32 %v7683_v54, %v7756_v58  ;;  %v7771_v10 = vand.u32 4294901760, %v7770_v0 }
 0x4d4   : > { %v7758_v3 = vand.u32 4294901760, %v7757_v61 }
 0x4d6   : > { %6687 = vmatmul.mubr.f32.vlgmr.msra.gmra.mrb[0].mxu1 %v6295_v55  ;;  %v7680_v55 = vsel %vm1266_vm4, %v7675_v51, %v7677_v47  ;;  %v7759_v11 = vsub.f32 %v7757_v61, %v7758_v3 }
 0x4d7   : > { %6710 = vmatpush1.msra.mxu1 %v6709_v20  ;;  %6773 = vmatprep.mubr.f32.mxu1 %v9597_v1  ;;  %v7685_v57 = vsel %vm297_vm3, %v7680_v55, 0 }
 0x4d8   : > { %6790 = vmatprep.subr.mxu1 %v6789_v25  ;;  %v7691_v59 = vand.u32 4294901760, %v7685_v57 }
 0x4da   : > { %v7774_v62 = vsub.f32 %v7685_v57, %v7691_v59 }
 0x4dc   : > { %v7775_v7 = vand.u32 4294901760, %v7774_v62 }
 0x4de   : > { %6779 = vmatmul.mubr.f32.vlgmr.msra.gmra.mrb[0].mxu1 %v6778_v2  ;;  %v7776_v12 = vsub.f32 %v7774_v62, %v7775_v7 }
 0x4df   : > { %6796 = vmatpush1.msra.mxu1 %v6795_v4  ;;  %6859 = vmatprep.mubr.f32.mxu1 %v9597_v1 }
 0x4e0   : > { %6869 = vmatprep.subr.mxu1 %v6786_v18  ;;  %v7777_v15 = vand.u32 4294901760, %v7776_v12  ;;  %v8166_v18 = vpop.permute.xlu0 %8165 }
 0x4e6   : > { %6861 = vmatmul.mubr.f32.vlgmr.msra.gmra.mrb[0].mxu1 %v6774_v19 }
 0x4e7   : > { %6872 = vmatpush1.msra.mxu1 %v6792_v23  ;;  %6935 = vmatprep.mubr.f32.mxu1 %v9597_v1 }
 0x4e8   : > { %6945 = vmatprep.subr.mxu1 %v6707_v14 }
 0x4ee   : > { %6938 = vmatmul.mubr.f32.vlgmr.msra.gmra.mrb[0].mxu1 %v6775_v22  ;;  %v9257_v22 = vld [vmem:[%s10219_s4 + $0x1c] sm:$0xf] }
 0x4ef   : > { %6947 = vmatpush1.msra.mxu1 %v6709_v20  ;;  %7010 = vmatprep.mubr.f32.mxu1 %v9597_v1 }
 0x4f0   : > { %7023 = vmatprep.subr.mxu1 %v6787_v29  ;;  %v8164_v29 = vpop.permute.xlu0 %8163 }
 0x4f1   : > { %v8169_v43 = vsel %vm3745_vm9, %v8164_v29, %v8166_v18 }
 0x4f6   : > { %7014 = vmatmul.mubr.f32.vlgmr.msra.gmra.mrb[0].mxu1 %v6776_v21  ;;  %v8172_v21 = vsel %vm293_vm0, %v9257_v22, 0 }
 0x4f7   : > { %7027 = vmatpush1.msra.mxu1 %v6793_v24  ;;  %7090 = vmatprep.mubr.f32.mxu1 %v9597_v1  ;;  %v8174_v24 = vsel %vm297_vm3, %v8169_v43, 0  ;;  %v8245_v26 = vand.u32 4294901760, %v8172_v21 }
 0x4f8   : > { %7099 = vmatprep.subr.mxu1 %v6707_v14  ;;  %v7760_v14 = vand.u32 4294901760, %v7759_v11  ;;  %v8180_v6 = vand.u32 4294901760, %v8174_v24 }
 0x4f9   : > { %v8246_v4 = vsub.f32 %v8172_v21, %v8245_v26 }
 0x4fa   : > { %v8263_v41 = vsub.f32 %v8174_v24, %v8180_v6 }
 0x4fb   : > { %v8247_v9 = vand.u32 4294901760, %v8246_v4 }
 0x4fc   : > { %v8264_v31 = vand.u32 4294901760, %v8263_v41 }
 0x4fd   : > { %v8248_v13 = vsub.f32 %v8246_v4, %v8247_v9 }
 0x4fe   : > { %7092 = vmatmul.mubr.f32.vlgmr.msra.gmra.mrb[0].mxu1 %v6774_v19 }
 0x4ff   : > { %7101 = vmatpush1.msra.mxu1 %v6709_v20  ;;  %7164 = vmatprep.mubr.f32.mxu1 %v9597_v1  ;;  %v8249_v32 = vand.u32 4294901760, %v8248_v13 }
 0x500   : > { %7199 = vmatprep.subr.mxu1 %v7198_v27 }
 0x506   : > { %7166 = vmatmul.mubr.f32.vlgmr.msra.gmra.mrb[0].mxu1 %v6774_v19  ;;  %v8170_v19 = vsel %vm3745_vm9, %v8166_v18, %v8168_v17 }
 0x507   : > { %7201 = vmatpush1.msra.mxu1 %v7200_v30  ;;  %7264 = vmatprep.mubr.f32.mxu1 %v9597_v1  ;;  %v8176_v20 = vsel %vm297_vm3, %v8170_v19, 0 }
 0x508   : > { %7281 = vmatprep.subr.mxu1 %v7280_v40  ;;  %v8178_v23 = vand.u32 4294901760, %v8176_v20 }
 0x50a   : > { %v8257_v25 = vsub.f32 %v8176_v20, %v8178_v23 }
 0x50c   : > { %v8258_v2 = vand.u32 4294901760, %v8257_v25 }
 0x50e   : > { %7270 = vmatmul.mubr.f32.vlgmr.msra.gmra.mrb[0].mxu1 %v7269_v45  ;;  %v8259_v5 = vsub.f32 %v8257_v25, %v8258_v2 }
 0x50f   : > { %7287 = vmatpush1.msra.mxu1 %v7286_v46  ;;  %7350 = vmatprep.mubr.f32.mxu1 %v9597_v1 }
 0x510   : > { %7360 = vmatprep.subr.mxu1 %v7277_v34  ;;  %v8260_v63 = vand.u32 4294901760, %v8259_v5  ;;  %v8659_v34 = vpop.permute.xlu0 %8658 }
 0x514   : > { %v9140_v57 = vpop.permute.xlu0 %9139 }
 0x516   : > { %7352 = vmatmul.mubr.f32.vlgmr.msra.gmra.mrb[0].mxu1 %v7265_v8 }
 0x517   : > { %7363 = vmatpush1.msra.mxu1 %v7283_v36  ;;  %7426 = vmatprep.mubr.f32.mxu1 %v9597_v1 }
 0x518   : > { %7436 = vmatprep.subr.mxu1 %v7198_v27 }
 0x51e   : > { %7429 = vmatmul.mubr.f32.vlgmr.msra.gmra.mrb[0].mxu1 %v7266_v35  ;;  %v9258_v35 = vld [vmem:[%s10219_s4 + $0x20] sm:$0xf] }
 0x51f   : > { %7438 = vmatpush1.msra.mxu1 %v7200_v30  ;;  %7501 = vmatprep.mubr.f32.mxu1 %v9597_v1 }
 0x520   : > { %7514 = vmatprep.subr.mxu1 %v7278_v16  ;;  %v8655_v16 = vpop.permute.xlu1 %8654 }
 0x521   : > { %v8660_v37 = vsel %vm272_vm1, %v8655_v16, %v8657_v28 }
 0x522   : > { %v8665_v40 = vsel %vm297_vm3, %v8660_v37, 0 }
 0x523   : > { %v8671_v44 = vand.u32 4294901760, %v8665_v40 }
 0x525   : > { %v8754_v47 = vsub.f32 %v8665_v40, %v8671_v44 }
 0x526   : > { %7505 = vmatmul.mubr.f32.vlgmr.msra.gmra.mrb[0].mxu1 %v7267_v38  ;;  %v8663_v38 = vsel %vm293_vm0, %v9258_v35, 0 }
 0x527   : > { %7518 = vmatpush1.msra.mxu1 %v7284_v39  ;;  %7581 = vmatprep.mubr.f32.mxu1 %v9597_v1  ;;  %v8736_v42 = vand.u32 4294901760, %v8663_v38  ;;  %v8755_v50 = vand.u32 4294901760, %v8754_v47 }
 0x528   : > { %7590 = vmatprep.subr.mxu1 %v7198_v27  ;;  %v8265_v27 = vsub.f32 %v8263_v41, %v8264_v31 }
 0x529   : > { %v8737_v46 = vsub.f32 %v8663_v38, %v8736_v42 }
 0x52a   : > { %v8266_v33 = vand.u32 4294901760, %v8265_v27 }
 0x52b   : > { %v8738_v49 = vand.u32 4294901760, %v8737_v46 }
 0x52d   : > { %v8739_v52 = vsub.f32 %v8737_v46, %v8738_v49 }
 0x52e   : > { %7583 = vmatmul.mubr.f32.vlgmr.msra.gmra.mrb[0].mxu1 %v7265_v8 }
 0x52f   : > { %7592 = vmatpush1.msra.mxu1 %v7200_v30  ;;  %7655 = vmatprep.mubr.f32.mxu1 %v9597_v1  ;;  %v8740_v55 = vand.u32 4294901760, %v8739_v52 }
 0x530   : > { %7690 = vmatprep.subr.mxu1 %v7689_v53 }
 0x536   : > { %7657 = vmatmul.mubr.f32.vlgmr.msra.gmra.mrb[0].mxu1 %v7265_v8  ;;  %v8661_v8 = vsel %vm272_vm1, %v8657_v28, %v8659_v34 }
 0x537   : > { %7692 = vmatpush1.msra.mxu1 %v7691_v59  ;;  %7755 = vmatprep.mubr.f32.mxu1 %v9597_v1  ;;  %v8667_v30 = vsel %vm297_vm3, %v8661_v8, 0 }
 0x538   : > { %7772 = vmatprep.subr.mxu1 %v7771_v10  ;;  %v8669_v36 = vand.u32 4294901760, %v8667_v30 }
 0x53a   : > { %v8748_v39 = vsub.f32 %v8667_v30, %v8669_v36 }
 0x53c   : > { %v8749_v45 = vand.u32 4294901760, %v8748_v39 }
 0x53e   : > { %7761 = vmatmul.mubr.f32.vlgmr.msra.gmra.mrb[0].mxu1 %v7760_v14  ;;  %v8750_v48 = vsub.f32 %v8748_v39, %v8749_v45 }
 0x53f   : > { %7778 = vmatpush1.msra.mxu1 %v7777_v15  ;;  %7841 = vmatprep.mubr.f32.mxu1 %v9597_v1 }
 0x540   : > { %7851 = vmatprep.subr.mxu1 %v7768_v56  ;;  %v8751_v51 = vand.u32 4294901760, %v8750_v48  ;;  %v9144_v56 = vld [vmem:[%s9705_s15] sm:$0xff] }
 0x546   : > { %7843 = vmatmul.mubr.f32.vlgmr.msra.gmra.mrb[0].mxu1 %v7756_v58 }
 0x547   : > { %7854 = vmatpush1.msra.mxu1 %v7774_v62  ;;  %7917 = vmatprep.mubr.f32.mxu1 %v9597_v1 }
 0x548   : > { %7927 = vmatprep.subr.mxu1 %v7689_v53 }
 0x54e   : > { %7920 = vmatmul.mubr.f32.vlgmr.msra.gmra.mrb[0].mxu1 %v7757_v61 }
 0x54f   : > { %7929 = vmatpush1.msra.mxu1 %v7691_v59  ;;  %7992 = vmatprep.mubr.f32.mxu1 %v9597_v1 }
 0x550   : > { %8005 = vmatprep.subr.mxu1 %v7769_v60 }
 0x556   : > { %7996 = vmatmul.mubr.f32.vlgmr.msra.gmra.mrb[0].mxu1 %v7758_v3 }
 0x557   : > { %8009 = vmatpush1.msra.mxu1 %v7775_v7  ;;  %8072 = vmatprep.mubr.f32.mxu1 %v9597_v1 }
 0x558   : > { %8081 = vmatprep.subr.mxu1 %v7689_v53  ;;  %v8756_v53 = vsub.f32 %v8754_v47, %v8755_v50 }
 0x55a   : > { %v8757_v54 = vand.u32 4294901760, %v8756_v53 }
 0x55e   : > { %8074 = vmatmul.mubr.f32.vlgmr.msra.gmra.mrb[0].mxu1 %v7756_v58 }
 0x55f   : > { %8083 = vmatpush1.msra.mxu1 %v7691_v59  ;;  %8146 = vmatprep.mubr.f32.mxu1 %v9597_v1  ;;  %v9146_v59 = vcombine.high %v9144_v56, %v9144_v56 }
 0x560   : > { %8179 = vmatprep.subr.mxu1 %v8178_v23 }
 0x566   : > { %8148 = vmatmul.mubr.f32.vlgmr.msra.gmra.mrb[0].mxu1 %v7756_v58 }
 0x567   : > { %8181 = vmatpush1.msra.mxu1 %v8180_v6  ;;  %8244 = vmatprep.mubr.f32.mxu1 %v9597_v1 }
 0x568   : > { %8261 = vmatprep.subr.mxu1 %v8260_v63 }
 0x56e   : > { %8250 = vmatmul.mubr.f32.vlgmr.msra.gmra.mrb[0].mxu1 %v8249_v32 }
 0x56f   : > { %8267 = vmatpush1.msra.mxu1 %v8266_v33  ;;  %8330 = vmatprep.mubr.f32.mxu1 %v9597_v1 }
 0x570   : > { %8340 = vmatprep.subr.mxu1 %v8257_v25 }
 0x576   : > { %8332 = vmatmul.mubr.f32.vlgmr.msra.gmra.mrb[0].mxu1 %v8245_v26 }
 0x577   : > { %8343 = vmatpush1.msra.mxu1 %v8263_v41  ;;  %8406 = vmatprep.mubr.f32.mxu1 %v9597_v1 }
 0x578   : > { %8416 = vmatprep.subr.mxu1 %v8178_v23 }
 0x57e   : > { %8409 = vmatmul.mubr.f32.vlgmr.msra.gmra.mrb[0].mxu1 %v8246_v4 }
 0x57f   : > { %8418 = vmatpush1.msra.mxu1 %v8180_v6  ;;  %8481 = vmatprep.mubr.f32.mxu1 %v9597_v1 }
 0x580   : > { %8494 = vmatprep.subr.mxu1 %v8258_v2 }
 0x586   : > { %8485 = vmatmul.mubr.f32.vlgmr.msra.gmra.mrb[0].mxu1 %v8247_v9 }
 0x587   : > { %8498 = vmatpush1.msra.mxu1 %v8264_v31  ;;  %8561 = vmatprep.mubr.f32.mxu1 %v9597_v1 }
 0x588   : > { %8570 = vmatprep.subr.mxu1 %v8178_v23 }
 0x58e   : > { %8563 = vmatmul.mubr.f32.vlgmr.msra.gmra.mrb[0].mxu1 %v8245_v26 }
 0x58f   : > { %8572 = vmatpush1.msra.mxu1 %v8180_v6  ;;  %8635 = vmatprep.mubr.f32.mxu1 %v9597_v1 }
 0x590   : > { %8670 = vmatprep.subr.mxu1 %v8669_v36 }
 0x596   : > { %8637 = vmatmul.mubr.f32.vlgmr.msra.gmra.mrb[0].mxu1 %v8245_v26 }
 0x597   : > { %8672 = vmatpush1.msra.mxu1 %v8671_v44  ;;  %8735 = vmatprep.mubr.f32.mxu1 %v9597_v1 }
 0x598   : > { %8752 = vmatprep.subr.mxu1 %v8751_v51 }
 0x59e   : > { %8741 = vmatmul.mubr.f32.vlgmr.msra.gmra.mrb[0].mxu1 %v8740_v55 }
 0x59f   : > { %8758 = vmatpush1.msra.mxu1 %v8757_v54  ;;  %8821 = vmatprep.mubr.f32.mxu1 %v9597_v1 }
 0x5a0   : > { %8831 = vmatprep.subr.mxu1 %v8748_v39 }
 0x5a6   : > { %8823 = vmatmul.mubr.f32.vlgmr.msra.gmra.mrb[0].mxu1 %v8736_v42 }
 0x5a7   : > { %8834 = vmatpush1.msra.mxu1 %v8754_v47  ;;  %8897 = vmatprep.mubr.f32.mxu1 %v9597_v1 }
 0x5a8   : > { %8907 = vmatprep.subr.mxu1 %v8669_v36 }
 0x5ae   : > { %8900 = vmatmul.mubr.f32.vlgmr.msra.gmra.mrb[0].mxu1 %v8737_v46 }
 0x5af   : > { %8909 = vmatpush1.msra.mxu1 %v8671_v44  ;;  %8972 = vmatprep.mubr.f32.mxu1 %v9597_v1 }
 0x5b0   : > { %8985 = vmatprep.subr.mxu1 %v8749_v45 }
 0x5b6   : > { %8976 = vmatmul.mubr.f32.vlgmr.msra.gmra.mrb[0].mxu1 %v8738_v49 }
 0x5b7   : > { %8989 = vmatpush1.msra.mxu1 %v8755_v50  ;;  %9052 = vmatprep.mubr.f32.mxu1 %v9597_v1 }
 0x5b8   : > { %9061 = vmatprep.subr.mxu1 %v8669_v36 }
 0x5be   : > { %9054 = vmatmul.mubr.f32.vlgmr.msra.gmra.mrb[0].mxu1 %v8736_v42 }
 0x5bf   : > { %9063 = vmatpush1.msra.mxu1 %v8671_v44  ;;  %9126 = vmatprep.mubr.f32.mxu1 %v9597_v1 }
 0x5c6   : > { %9128 = vmatmul.mubr.f32.vlgmr.msra.gmra.mrb[0].mxu1 %v8736_v42 }
 0x699   : > { %v9129_v58 = vpop.f32.mrb[0].mxu1 }
 0x69a   : > { %v9142_v60 = vadd.f32 %v9140_v57, %v9129_v58  ;;  %v9131_v61 = vpop.f32.mrb[1].mxu1 }
 0x69b   : > { %v9143_v62 = vadd.f32 %v9140_v57, %v9131_v61 }
 0x69c   : > { %v9148_v0 = vadd.f32 %v9144_v56, %v9142_v60 }
 0x69d   : > { %v9149_v3 = vadd.f32 %v9146_v59, %v9143_v62 }
 0x69e   : > { %vm9150_vm12 = vcmp.ge.f32.partialorder %v9148_v0, 0.0  ;;  %v9152_v7 = vmul.f32 0.2, %v9148_v0 }
 0x69f   : > { %vm9151_vm13 = vcmp.ge.f32.partialorder %v9149_v3, 0.0  ;;  %v9153_v10 = vmul.f32 0.2, %v9149_v3 }
 0x6a0   : > { %v9154_v1 = vsel %vm9150_vm12, %v9148_v0, %v9152_v7 }
 0x6a1   : > { %v9155_v11 = vsel %vm9151_vm13, %v9149_v3, %v9153_v10 }
 0x6a2   : > { %v9158_v12 = vcombine.low %v9154_v1, %v9155_v11 }
 0x6a4   : > { %9160 = vst [vmem:[%s244_s12] sm:$0xff] %v9158_v12 }
 0x6a5   : > { %9546 = shalt.err (!%p9543_p3)
}
 0x6a6   : > { %s9547_s9 = scalar_lea.hbm %s10173_s18, 128  ;;  %s9551_s13 = scalar_lea.hbm %s10221_s6, 256 }
 0x6a7   : > { %p9548_p4 = scmp.ne.s32.totalorder %s10173_s18, %s9547_s9  ;;  %p9552_p9 = scmp.lt.u32.totalorder %s10173_s18, %s10221_s6 }
 0x6a8   : > { %p9553_p10 = scmp.lt.u32.totalorder %s9551_s13, %s9547_s9  ;;  %p9555_p12 = scmp.lt.u32.totalorder %s9547_s9, %s10173_s18 }
 0x6a9   : > { %p9549_p7 = pnand %p9548_p4, %p9681_p5 }
 0x6aa   : > { %p9554_p11 = por %p9553_p10, %p9552_p9 }
 0x6ab   : > { %p9550_p8 = pneg %p9549_p7 }
 0x6ac   : > { %p9556_p13 = por %p9555_p12, %p9554_p11 }
 0x6ae   : > { %p9557_p0 = pnand %p9556_p13, %p9550_p8 }
 0x6b0   : > { %9560 = shalt.err (!%p9557_p0)
}
 0x6b1   : > { %9478 = dma.vmem_to_hbm [thread:$0]  (%p9681_p5), %s10175_s14, 128, %s10173_s18, %s9162_s26  }
 0x6b2 PF: > { %p9484_p1 = scmp.ge.s32.totalorder %s9595_s24, 2  ;;  %s9188_s12 = sand.u32 1, %s9583_s21  }
 0x6b3   : > { %s9189_s15 = scalar_lea.sflag [#allocation5], %s9188_s12 }
 0x6b4   : > { %p9481_p2 = pnand %p9484_p1, %p9685_p6 }
 0x6b6   : > { %9578 = dma.done.wait (!%p9481_p2), %s9189_s15, 128  }
 0x6b7   : > { %9580 = vsyncadd (!%p9481_p2), %s9189_s15, 4294967168  ;;  %p16_p3 = scmp.ge.s32.totalorder %s9668_s27, 4   ;;  %s10224_s21 = smov %s9587_s22 }
 0x6b8   : > { %s10225_s22 = smov %s9591_s23  ;;  %s10226_s23 = smov %s9679_s30 }
 0x6b9   : > { %s10227_s24 = smov %s9668_s27  ;;  %18 = sbr.rel (!%p16_p3) target bundleno = 3 (0x3), region = 96 }
 0x6c0   :  { %9194 = vsyncpa [#allocation5], 1 }
 0x6c1   :  { %9196 = vsyncpa [#allocation5 + $0x1], 1 }

</bundles_post_ra>
